<compile_context>
chip_gen: v7x
topology: tpu7x:2x2x1
jax: 0.10.0
libtpu: 0.0.40
codegen_flags: <defaults>
</compile_context>

<pallas_src>
import functools

import jax
import jax.numpy as jnp
import numpy as np
from jax.experimental import pallas as pl
from jax.experimental.pallas import tpu as pltpu


def _attention_kernel(x_ref, wq_ref, wk_ref, wv_ref, wpf_ref, bpf_ref,
                      out_ref, *, num_heads, scale):
    """One batch element per grid step.

    x_ref   : (1, N, D)    activations (compute dtype)
    wq_ref  : (D, D)       W_q^T   (already transposed: y = x @ wq_ref)
    wk_ref  : (D, D)       W_k^T
    wv_ref  : (D, D)       W_v^T
    wpf_ref : (2D, 2D)     block_diag(W_proj^T, W_proj^T)  (fused projection)
    bpf_ref : (1, 2D)      [b_proj, 0]  (float32)
    out_ref : (1, N, 2D)   [:, :, :D] = attention output, [:, :, D:] = vproj
    """
    n = x_ref.shape[1]
    dim = x_ref.shape[2]
    d = dim // num_heads
    cdt = wq_ref.dtype  # compute dtype for MXU operands (f32 or bf16)

    x = x_ref[0]  # (N, D)

    # q/k/v: three clean matmuls against pre-transposed weights (no .T,
    # no column slicing of a 3D-wide qkv result).  f32 accumulation.
    q = jnp.dot(x, wq_ref[...], preferred_element_type=jnp.float32) * scale
    k = jnp.dot(x, wk_ref[...], preferred_element_type=jnp.float32)
    v = jnp.dot(x, wv_ref[...], preferred_element_type=jnp.float32)

    # Head split: move heads to a leading batch axis via stack of lane slices
    # (avoids the minor-dim shape_cast a direct (N, H*d)->(H, N, d) reshape
    # would require).
    def to_heads(a):
        return jnp.stack(
            [a[:, h * d:(h + 1) * d] for h in range(num_heads)],
            axis=0).astype(cdt)  # (H, N, d)

    qh = to_heads(q)
    kh = to_heads(k)
    vh = to_heads(v)

    # Batched attention over all heads at once (single dot_general per stage,
    # single fused softmax; accumulation in f32).
    dots = jnp.einsum('hnd,hmd->hnm', qh, kh,
                      preferred_element_type=jnp.float32)      # (H, N, N)
    dots = dots - jnp.max(dots, axis=-1, keepdims=True)
    e = jnp.exp(dots)
    attn = e * pl.reciprocal(jnp.sum(e, axis=-1, keepdims=True), approx=True)
    ctx = jnp.einsum('hnm,hmd->hnd', attn.astype(cdt), vh,
                     preferred_element_type=jnp.float32)       # (H, N, d)

    # Merge heads back onto lanes and append v -> a single (N, 2D) operand.
    # One MXU call against block_diag(Wp^T, Wp^T) yields [out_proj | vproj]
    # as a 2D(=128)-lane-wide result -> lane-dense (unmasked) output stores.
    fused_in = jnp.concatenate(
        [ctx[h] for h in range(num_heads)] + [v], axis=-1).astype(cdt)
    res = jnp.dot(fused_in, wpf_ref[...],
                  preferred_element_type=jnp.float32) + bpf_ref[...]
    out_ref[0] = res.astype(out_ref.dtype)


def attention_forward(x, w_qkv, w_proj, b_proj, *, num_heads,
                      compute_dtype=jnp.bfloat16):
    """x: (B, N, D) float32.  Returns (out, vproj), each (B, N, D) float32.

    compute_dtype: MXU operand dtype (bf16 recommended on v6e/v7x; f32 exact).
    Accumulation is always float32.
    """
    B, N, D = x.shape
    head_dim = D // num_heads
    scale = float(head_dim) ** (-0.5)

    # Wrapper-side weight prep (cheap XLA ops; in a real model these would be
    # folded into parameter loading once, not per call).
    wq_t = w_qkv[0 * D:1 * D].T.astype(compute_dtype)   # (D, D)
    wk_t = w_qkv[1 * D:2 * D].T.astype(compute_dtype)   # (D, D)
    wv_t = w_qkv[2 * D:3 * D].T.astype(compute_dtype)   # (D, D)

    wp_t = w_proj.T
    z = jnp.zeros((D, D), wp_t.dtype)
    w_fused = jnp.block([[wp_t, z], [z, wp_t]]).astype(compute_dtype)  # (2D,2D)
    b_fused = jnp.concatenate(
        [jnp.reshape(b_proj, (1, D)).astype(jnp.float32),
         jnp.zeros((1, D), jnp.float32)], axis=-1)                     # (1,2D)

    x_c = x.astype(compute_dtype)

    kernel = functools.partial(_attention_kernel, num_heads=num_heads,
                               scale=scale)

    # Weight/bias index_maps are constant -> they are not re-DMA'd per step.
    # (If scaled to real ViT sizes on v7x's 64 MiB VMEM, budget with
    #  vmem_limit_bytes and tile the projection instead of full-weight blocks.)
    grid_spec = pltpu.PrefetchScalarGridSpec(
        num_scalar_prefetch=0,
        grid=(B,),  # parallel over batch: feeds both TensorCores on v7x.
        in_specs=[
            pl.BlockSpec((1, N, D), lambda b: (b, 0, 0)),      # x
            pl.BlockSpec((D, D), lambda b: (0, 0)),            # Wq^T
            pl.BlockSpec((D, D), lambda b: (0, 0)),            # Wk^T
            pl.BlockSpec((D, D), lambda b: (0, 0)),            # Wv^T
            pl.BlockSpec((2 * D, 2 * D), lambda b: (0, 0)),    # fused Wp^T
            pl.BlockSpec((1, 2 * D), lambda b: (0, 0)),        # fused bias
        ],
        out_specs=pl.BlockSpec((1, N, 2 * D), lambda b: (b, 0, 0)),
    )

    fused = pl.pallas_call(
        kernel,
        out_shape=jax.ShapeDtypeStruct((B, N, 2 * D), jnp.float32),
        grid_spec=grid_spec,
        compiler_params=pltpu.CompilerParams(
            dimension_semantics=("parallel",)),
    )(x_c, wq_t, wk_t, wv_t, w_fused, b_fused)

    out = fused[..., :D]
    vproj = fused[..., D:]
    return out, vproj


def attention_reference(x, w_qkv, w_proj, b_proj, *, num_heads):
    """Pure-JAX float32 reference mirroring the PyTorch forward exactly."""
    B, N, D = x.shape
    d = D // num_heads
    scale = float(d) ** (-0.5)

    qkv = x @ w_qkv.T                                        # (B, N, 3D)
    qkv = qkv.reshape(B, N, 3, num_heads, d)
    qkv = jnp.transpose(qkv, (2, 0, 3, 1, 4))                # (3, B, H, N, d)
    q, k, v = qkv[0], qkv[1], qkv[2]

    dots = jnp.einsum('bhid,bhjd->bhij', q, k) * scale
    attn = jax.nn.softmax(dots, axis=-1)
    out = jnp.einsum('bhij,bhjd->bhid', attn, v)             # (B, H, N, d)
    out = jnp.transpose(out, (0, 2, 1, 3)).reshape(B, N, D)
    out = out @ w_proj.T + b_proj

    v_flat = jnp.transpose(v, (0, 2, 1, 3)).reshape(B, N, D)
    vproj = v_flat @ w_proj.T
    return out, vproj


if __name__ == "__main__":
    # Small config consistent with the module: dim divisible by num_heads.
    B, N, D = 2, 16, 64
    NUM_HEADS = 8

    key = jax.random.PRNGKey(0)
    kx, kqkv, kproj, kb = jax.random.split(key, 4)

    x = jax.random.normal(kx, (B, N, D), dtype=jnp.float32)
    # Deterministic synthetic parameters (PyTorch Linear layout).
    w_qkv = jax.random.normal(kqkv, (3 * D, D), dtype=jnp.float32) * 0.02
    w_proj = jax.random.normal(kproj, (D, D), dtype=jnp.float32) * 0.02
    b_proj = jax.random.normal(kb, (D,), dtype=jnp.float32) * 0.02

    out_ref, vproj_ref = attention_reference(
        x, w_qkv, w_proj, b_proj, num_heads=NUM_HEADS)

    # Exact-operand (f32) path: tight check (approx reciprocal adds ~1e-4 rel).
    out32, vproj32 = attention_forward(
        x, w_qkv, w_proj, b_proj, num_heads=NUM_HEADS,
        compute_dtype=jnp.float32)
    jax.block_until_ready(out32)
    jax.block_until_ready(vproj32)
    np.testing.assert_allclose(np.asarray(out32), np.asarray(out_ref),
                               rtol=1e-2, atol=2e-4)
    np.testing.assert_allclose(np.asarray(vproj32), np.asarray(vproj_ref),
                               rtol=1e-2, atol=2e-4)

    # bf16-operand path (v6e/v7x MXU rate), f32 accumulation: loose check.
    out_bf, vproj_bf = attention_forward(
        x, w_qkv, w_proj, b_proj, num_heads=NUM_HEADS,
        compute_dtype=jnp.bfloat16)
    jax.block_until_ready(out_bf)
    jax.block_until_ready(vproj_bf)
    np.testing.assert_allclose(np.asarray(out_bf), np.asarray(out_ref),
                               rtol=5e-2, atol=5e-3)
    np.testing.assert_allclose(np.asarray(vproj_bf), np.asarray(vproj_ref),
                               rtol=5e-2, atol=5e-3)

    print("KERNEL_OK")
</pallas_src>

<mosaic_0001>
module attributes {stable_mosaic.version = 11 : i64} {
  func.func @_attention_kernel(%arg0: i32, %arg1: memref<1x16x64xf32, #tpu.memory_space<vmem>>, %arg2: memref<64x64xf32, #tpu.memory_space<vmem>>, %arg3: memref<64x64xf32, #tpu.memory_space<vmem>>, %arg4: memref<64x64xf32, #tpu.memory_space<vmem>>, %arg5: memref<128x128xf32, #tpu.memory_space<vmem>>, %arg6: memref<1x128xf32, #tpu.memory_space<vmem>>, %arg7: memref<1x16x128xf32, #tpu.memory_space<vmem>>) attributes {dimension_semantics = [#tpu.dimension_semantics<parallel>], iteration_bounds = array<i64: 2>, scalar_prefetch = 0 : i64, scratch_operands = 0 : i64, tpu.core_type = #tpu.core_type<tc>, window_params = [{transform_indices = @transform_0, window_bounds = array<i64: 1, 16, 64>}, {pipeline_mode = #tpu.pipeline_mode<synchronous>, transform_indices = @transform_1, window_bounds = array<i64: 64, 64>}, {pipeline_mode = #tpu.pipeline_mode<synchronous>, transform_indices = @transform_2, window_bounds = array<i64: 64, 64>}, {pipeline_mode = #tpu.pipeline_mode<synchronous>, transform_indices = @transform_3, window_bounds = array<i64: 64, 64>}, {pipeline_mode = #tpu.pipeline_mode<synchronous>, transform_indices = @transform_4, window_bounds = array<i64: 128, 128>}, {pipeline_mode = #tpu.pipeline_mode<synchronous>, transform_indices = @transform_5, window_bounds = array<i64: 1, 128>}, {transform_indices = @transform_6, window_bounds = array<i64: 1, 16, 128>}]} {
    %c0 = arith.constant 0 : index
    %c0_0 = arith.constant 0 : index
    %c0_1 = arith.constant 0 : index
    %0 = vector.load %arg1[%c0, %c0_0, %c0_1] : memref<1x16x64xf32, #tpu.memory_space<vmem>>, vector<1x16x64xf32>
    %1 = vector.shape_cast %0 : vector<1x16x64xf32> to vector<16x64xf32>
    %c0_2 = arith.constant 0 : index
    %c0_3 = arith.constant 0 : index
    %2 = vector.load %arg2[%c0_2, %c0_3] : memref<64x64xf32, #tpu.memory_space<vmem>>, vector<64x64xf32>
    %cst = arith.constant dense<0.000000e+00> : vector<16x64xf32>
    %3 = tpu.matmul %1, %2, %cst {dimension_numbers = #tpu.dot_dimension_numbers<[1], [0], [0], [1], [0, 0, 1, 1], [], []>} : vector<16x64xf32>, vector<64x64xf32>, vector<16x64xf32> -> vector<16x64xf32>
    %cst_4 = arith.constant 0.353553385 : f32
    %4 = vector.broadcast %cst_4 : f32 to vector<16x64xf32>
    %5 = arith.mulf %3, %4 : vector<16x64xf32>
    %c0_5 = arith.constant 0 : index
    %c0_6 = arith.constant 0 : index
    %6 = vector.load %arg3[%c0_5, %c0_6] : memref<64x64xf32, #tpu.memory_space<vmem>>, vector<64x64xf32>
    %cst_7 = arith.constant dense<0.000000e+00> : vector<16x64xf32>
    %7 = tpu.matmul %1, %6, %cst_7 {dimension_numbers = #tpu.dot_dimension_numbers<[1], [0], [0], [1], [0, 0, 1, 1], [], []>} : vector<16x64xf32>, vector<64x64xf32>, vector<16x64xf32> -> vector<16x64xf32>
    %c0_8 = arith.constant 0 : index
    %c0_9 = arith.constant 0 : index
    %8 = vector.load %arg4[%c0_8, %c0_9] : memref<64x64xf32, #tpu.memory_space<vmem>>, vector<64x64xf32>
    %cst_10 = arith.constant dense<0.000000e+00> : vector<16x64xf32>
    %9 = tpu.matmul %1, %8, %cst_10 {dimension_numbers = #tpu.dot_dimension_numbers<[1], [0], [0], [1], [0, 0, 1, 1], [], []>} : vector<16x64xf32>, vector<64x64xf32>, vector<16x64xf32> -> vector<16x64xf32>
    %10 = vector.extract_strided_slice %5 {offsets = [0, 0], sizes = [16, 8], strides = [1, 1]} : vector<16x64xf32> to vector<16x8xf32>
    %11 = vector.extract_strided_slice %5 {offsets = [0, 8], sizes = [16, 8], strides = [1, 1]} : vector<16x64xf32> to vector<16x8xf32>
    %12 = vector.extract_strided_slice %5 {offsets = [0, 16], sizes = [16, 8], strides = [1, 1]} : vector<16x64xf32> to vector<16x8xf32>
    %13 = vector.extract_strided_slice %5 {offsets = [0, 24], sizes = [16, 8], strides = [1, 1]} : vector<16x64xf32> to vector<16x8xf32>
    %14 = vector.extract_strided_slice %5 {offsets = [0, 32], sizes = [16, 8], strides = [1, 1]} : vector<16x64xf32> to vector<16x8xf32>
    %15 = vector.extract_strided_slice %5 {offsets = [0, 40], sizes = [16, 8], strides = [1, 1]} : vector<16x64xf32> to vector<16x8xf32>
    %16 = vector.extract_strided_slice %5 {offsets = [0, 48], sizes = [16, 8], strides = [1, 1]} : vector<16x64xf32> to vector<16x8xf32>
    %17 = vector.extract_strided_slice %5 {offsets = [0, 56], sizes = [16, 8], strides = [1, 1]} : vector<16x64xf32> to vector<16x8xf32>
    %18 = vector.shape_cast %10 : vector<16x8xf32> to vector<1x16x8xf32>
    %19 = vector.shape_cast %11 : vector<16x8xf32> to vector<1x16x8xf32>
    %20 = vector.shape_cast %12 : vector<16x8xf32> to vector<1x16x8xf32>
    %21 = vector.shape_cast %13 : vector<16x8xf32> to vector<1x16x8xf32>
    %22 = vector.shape_cast %14 : vector<16x8xf32> to vector<1x16x8xf32>
    %23 = vector.shape_cast %15 : vector<16x8xf32> to vector<1x16x8xf32>
    %24 = vector.shape_cast %16 : vector<16x8xf32> to vector<1x16x8xf32>
    %25 = vector.shape_cast %17 : vector<16x8xf32> to vector<1x16x8xf32>
    %26 = tpu.concatenate %18, %19, %20, %21, %22, %23, %24, %25 in 0 : vector<1x16x8xf32>, vector<1x16x8xf32>, vector<1x16x8xf32>, vector<1x16x8xf32>, vector<1x16x8xf32>, vector<1x16x8xf32>, vector<1x16x8xf32>, vector<1x16x8xf32> -> vector<8x16x8xf32>
    %27 = vector.extract_strided_slice %7 {offsets = [0, 0], sizes = [16, 8], strides = [1, 1]} : vector<16x64xf32> to vector<16x8xf32>
    %28 = vector.extract_strided_slice %7 {offsets = [0, 8], sizes = [16, 8], strides = [1, 1]} : vector<16x64xf32> to vector<16x8xf32>
    %29 = vector.extract_strided_slice %7 {offsets = [0, 16], sizes = [16, 8], strides = [1, 1]} : vector<16x64xf32> to vector<16x8xf32>
    %30 = vector.extract_strided_slice %7 {offsets = [0, 24], sizes = [16, 8], strides = [1, 1]} : vector<16x64xf32> to vector<16x8xf32>
    %31 = vector.extract_strided_slice %7 {offsets = [0, 32], sizes = [16, 8], strides = [1, 1]} : vector<16x64xf32> to vector<16x8xf32>
    %32 = vector.extract_strided_slice %7 {offsets = [0, 40], sizes = [16, 8], strides = [1, 1]} : vector<16x64xf32> to vector<16x8xf32>
    %33 = vector.extract_strided_slice %7 {offsets = [0, 48], sizes = [16, 8], strides = [1, 1]} : vector<16x64xf32> to vector<16x8xf32>
    %34 = vector.extract_strided_slice %7 {offsets = [0, 56], sizes = [16, 8], strides = [1, 1]} : vector<16x64xf32> to vector<16x8xf32>
    %35 = vector.shape_cast %27 : vector<16x8xf32> to vector<1x16x8xf32>
    %36 = vector.shape_cast %28 : vector<16x8xf32> to vector<1x16x8xf32>
    %37 = vector.shape_cast %29 : vector<16x8xf32> to vector<1x16x8xf32>
    %38 = vector.shape_cast %30 : vector<16x8xf32> to vector<1x16x8xf32>
    %39 = vector.shape_cast %31 : vector<16x8xf32> to vector<1x16x8xf32>
    %40 = vector.shape_cast %32 : vector<16x8xf32> to vector<1x16x8xf32>
    %41 = vector.shape_cast %33 : vector<16x8xf32> to vector<1x16x8xf32>
    %42 = vector.shape_cast %34 : vector<16x8xf32> to vector<1x16x8xf32>
    %43 = tpu.concatenate %35, %36, %37, %38, %39, %40, %41, %42 in 0 : vector<1x16x8xf32>, vector<1x16x8xf32>, vector<1x16x8xf32>, vector<1x16x8xf32>, vector<1x16x8xf32>, vector<1x16x8xf32>, vector<1x16x8xf32>, vector<1x16x8xf32> -> vector<8x16x8xf32>
    %44 = vector.extract_strided_slice %9 {offsets = [0, 0], sizes = [16, 8], strides = [1, 1]} : vector<16x64xf32> to vector<16x8xf32>
    %45 = vector.extract_strided_slice %9 {offsets = [0, 8], sizes = [16, 8], strides = [1, 1]} : vector<16x64xf32> to vector<16x8xf32>
    %46 = vector.extract_strided_slice %9 {offsets = [0, 16], sizes = [16, 8], strides = [1, 1]} : vector<16x64xf32> to vector<16x8xf32>
    %47 = vector.extract_strided_slice %9 {offsets = [0, 24], sizes = [16, 8], strides = [1, 1]} : vector<16x64xf32> to vector<16x8xf32>
    %48 = vector.extract_strided_slice %9 {offsets = [0, 32], sizes = [16, 8], strides = [1, 1]} : vector<16x64xf32> to vector<16x8xf32>
    %49 = vector.extract_strided_slice %9 {offsets = [0, 40], sizes = [16, 8], strides = [1, 1]} : vector<16x64xf32> to vector<16x8xf32>
    %50 = vector.extract_strided_slice %9 {offsets = [0, 48], sizes = [16, 8], strides = [1, 1]} : vector<16x64xf32> to vector<16x8xf32>
    %51 = vector.extract_strided_slice %9 {offsets = [0, 56], sizes = [16, 8], strides = [1, 1]} : vector<16x64xf32> to vector<16x8xf32>
    %52 = vector.shape_cast %44 : vector<16x8xf32> to vector<1x16x8xf32>
    %53 = vector.shape_cast %45 : vector<16x8xf32> to vector<1x16x8xf32>
    %54 = vector.shape_cast %46 : vector<16x8xf32> to vector<1x16x8xf32>
    %55 = vector.shape_cast %47 : vector<16x8xf32> to vector<1x16x8xf32>
    %56 = vector.shape_cast %48 : vector<16x8xf32> to vector<1x16x8xf32>
    %57 = vector.shape_cast %49 : vector<16x8xf32> to vector<1x16x8xf32>
    %58 = vector.shape_cast %50 : vector<16x8xf32> to vector<1x16x8xf32>
    %59 = vector.shape_cast %51 : vector<16x8xf32> to vector<1x16x8xf32>
    %60 = tpu.concatenate %52, %53, %54, %55, %56, %57, %58, %59 in 0 : vector<1x16x8xf32>, vector<1x16x8xf32>, vector<1x16x8xf32>, vector<1x16x8xf32>, vector<1x16x8xf32>, vector<1x16x8xf32>, vector<1x16x8xf32>, vector<1x16x8xf32> -> vector<8x16x8xf32>
    "tpu.trace_start"() <{level = 10 : i32, message = "hnd,hmd->hnm"}> : () -> ()
    %cst_11 = arith.constant dense<0.000000e+00> : vector<8x16x16xf32>
    %61 = tpu.matmul %26, %43, %cst_11 {dimension_numbers = #tpu.dot_dimension_numbers<[2], [2], [1], [1], [0, 0, 0, 1, 1, 1], [0], [0]>} : vector<8x16x8xf32>, vector<8x16x8xf32>, vector<8x16x16xf32> -> vector<8x16x16xf32>
    "tpu.trace_stop"() : () -> ()
    %cst_12 = arith.constant dense<0xFF800000> : vector<8x16xf32>
    %62 = vector.multi_reduction <maximumf>, %61, %cst_12 [2] : vector<8x16x16xf32> to vector<8x16xf32>
    %63 = vector.shape_cast %62 : vector<8x16xf32> to vector<8x16x1xf32>
    %64 = vector.broadcast %63 : vector<8x16x1xf32> to vector<8x16x16xf32>
    %65 = arith.subf %61, %64 : vector<8x16x16xf32>
    %66 = math.exp %65 : vector<8x16x16xf32>
    %cst_13 = arith.constant dense<0.000000e+00> : vector<8x16xf32>
    %67 = vector.multi_reduction <add>, %66, %cst_13 [2] : vector<8x16x16xf32> to vector<8x16xf32>
    %68 = vector.shape_cast %67 : vector<8x16xf32> to vector<8x16x1xf32>
    %69 = tpu.reciprocal %68 {approx = true} : vector<8x16x1xf32> -> vector<8x16x1xf32>
    %70 = vector.broadcast %69 : vector<8x16x1xf32> to vector<8x16x16xf32>
    %71 = arith.mulf %66, %70 : vector<8x16x16xf32>
    "tpu.trace_start"() <{level = 10 : i32, message = "hnm,hmd->hnd"}> : () -> ()
    %cst_14 = arith.constant dense<0.000000e+00> : vector<8x16x8xf32>
    %72 = tpu.matmul %71, %60, %cst_14 {dimension_numbers = #tpu.dot_dimension_numbers<[2], [1], [1], [2], [0, 0, 0, 1, 1, 2], [0], [0]>} : vector<8x16x16xf32>, vector<8x16x8xf32>, vector<8x16x8xf32> -> vector<8x16x8xf32>
    "tpu.trace_stop"() : () -> ()
    %73 = vector.extract_strided_slice %72 {offsets = [0, 0, 0], sizes = [1, 16, 8], strides = [1, 1, 1]} : vector<8x16x8xf32> to vector<1x16x8xf32>
    %74 = vector.shape_cast %73 : vector<1x16x8xf32> to vector<16x8xf32>
    %75 = vector.extract_strided_slice %72 {offsets = [1, 0, 0], sizes = [1, 16, 8], strides = [1, 1, 1]} : vector<8x16x8xf32> to vector<1x16x8xf32>
    %76 = vector.shape_cast %75 : vector<1x16x8xf32> to vector<16x8xf32>
    %77 = vector.extract_strided_slice %72 {offsets = [2, 0, 0], sizes = [1, 16, 8], strides = [1, 1, 1]} : vector<8x16x8xf32> to vector<1x16x8xf32>
    %78 = vector.shape_cast %77 : vector<1x16x8xf32> to vector<16x8xf32>
    %79 = vector.extract_strided_slice %72 {offsets = [3, 0, 0], sizes = [1, 16, 8], strides = [1, 1, 1]} : vector<8x16x8xf32> to vector<1x16x8xf32>
    %80 = vector.shape_cast %79 : vector<1x16x8xf32> to vector<16x8xf32>
    %81 = vector.extract_strided_slice %72 {offsets = [4, 0, 0], sizes = [1, 16, 8], strides = [1, 1, 1]} : vector<8x16x8xf32> to vector<1x16x8xf32>
    %82 = vector.shape_cast %81 : vector<1x16x8xf32> to vector<16x8xf32>
    %83 = vector.extract_strided_slice %72 {offsets = [5, 0, 0], sizes = [1, 16, 8], strides = [1, 1, 1]} : vector<8x16x8xf32> to vector<1x16x8xf32>
    %84 = vector.shape_cast %83 : vector<1x16x8xf32> to vector<16x8xf32>
    %85 = vector.extract_strided_slice %72 {offsets = [6, 0, 0], sizes = [1, 16, 8], strides = [1, 1, 1]} : vector<8x16x8xf32> to vector<1x16x8xf32>
    %86 = vector.shape_cast %85 : vector<1x16x8xf32> to vector<16x8xf32>
    %87 = vector.extract_strided_slice %72 {offsets = [7, 0, 0], sizes = [1, 16, 8], strides = [1, 1, 1]} : vector<8x16x8xf32> to vector<1x16x8xf32>
    %88 = vector.shape_cast %87 : vector<1x16x8xf32> to vector<16x8xf32>
    %89 = tpu.concatenate %74, %76, %78, %80, %82, %84, %86, %88, %9 in 1 : vector<16x8xf32>, vector<16x8xf32>, vector<16x8xf32>, vector<16x8xf32>, vector<16x8xf32>, vector<16x8xf32>, vector<16x8xf32>, vector<16x8xf32>, vector<16x64xf32> -> vector<16x128xf32>
    %c0_15 = arith.constant 0 : index
    %c0_16 = arith.constant 0 : index
    %90 = vector.load %arg5[%c0_15, %c0_16] : memref<128x128xf32, #tpu.memory_space<vmem>>, vector<128x128xf32>
    %cst_17 = arith.constant dense<0.000000e+00> : vector<16x128xf32>
    %91 = tpu.matmul %89, %90, %cst_17 {dimension_numbers = #tpu.dot_dimension_numbers<[1], [0], [0], [1], [0, 0, 1, 1], [], []>} : vector<16x128xf32>, vector<128x128xf32>, vector<16x128xf32> -> vector<16x128xf32>
    %c0_18 = arith.constant 0 : index
    %c0_19 = arith.constant 0 : index
    %92 = vector.load %arg6[%c0_18, %c0_19] : memref<1x128xf32, #tpu.memory_space<vmem>>, vector<1x128xf32>
    %93 = vector.broadcast %92 : vector<1x128xf32> to vector<16x128xf32>
    %94 = arith.addf %91, %93 : vector<16x128xf32>
    %c0_20 = arith.constant 0 : index
    %c0_21 = arith.constant 0 : index
    %c0_22 = arith.constant 0 : index
    %95 = vector.load %arg7[%c0_20, %c0_21, %c0_22] : memref<1x16x128xf32, #tpu.memory_space<vmem>>, vector<1x16x128xf32>
    %96 = vector.shape_cast %95 : vector<1x16x128xf32> to vector<16x128xf32>
    %97 = vector.shape_cast %94 : vector<16x128xf32> to vector<1x16x128xf32>
    tpu.vector_store %arg7[%c0_20, %c0_21, %c0_22], %97 {strides = array<i32>} : memref<1x16x128xf32, #tpu.memory_space<vmem>>, vector<1x16x128xf32>,
    return
  }
  func.func @transform_0(%arg0: i32) -> (i32, i32, i32) {
    %c0_i32 = arith.constant 0 : i32
    %c0_i32_0 = arith.constant 0 : i32
    %c0_i32_1 = arith.constant 0 : i32
    return %arg0, %c0_i32, %c0_i32_0 : i32, i32, i32
  }
  func.func @transform_1(%arg0: i32) -> (i32, i32) {
    %c0_i32 = arith.constant 0 : i32
    %c0_i32_0 = arith.constant 0 : i32
    %c0_i32_1 = arith.constant 0 : i32
    return %c0_i32, %c0_i32_0 : i32, i32
  }
  func.func @transform_2(%arg0: i32) -> (i32, i32) {
    %c0_i32 = arith.constant 0 : i32
    %c0_i32_0 = arith.constant 0 : i32
    %c0_i32_1 = arith.constant 0 : i32
    return %c0_i32, %c0_i32_0 : i32, i32
  }
  func.func @transform_3(%arg0: i32) -> (i32, i32) {
    %c0_i32 = arith.constant 0 : i32
    %c0_i32_0 = arith.constant 0 : i32
    %c0_i32_1 = arith.constant 0 : i32
    return %c0_i32, %c0_i32_0 : i32, i32
  }
  func.func @transform_4(%arg0: i32) -> (i32, i32) {
    %c0_i32 = arith.constant 0 : i32
    %c0_i32_0 = arith.constant 0 : i32
    %c0_i32_1 = arith.constant 0 : i32
    return %c0_i32, %c0_i32_0 : i32, i32
  }
  func.func @transform_5(%arg0: i32) -> (i32, i32) {
    %c0_i32 = arith.constant 0 : i32
    %c0_i32_0 = arith.constant 0 : i32
    %c0_i32_1 = arith.constant 0 : i32
    return %c0_i32, %c0_i32_0 : i32, i32
  }
  func.func @transform_6(%arg0: i32) -> (i32, i32, i32) {
    %c0_i32 = arith.constant 0 : i32
    %c0_i32_0 = arith.constant 0 : i32
    %c0_i32_1 = arith.constant 0 : i32
    return %arg0, %c0_i32, %c0_i32_0 : i32, i32, i32
  }
}

</mosaic_0001>

<bundles_post_ra>
// kernel: tpu_custom_call.1
= control target key start
LH: loop header
LB: loop body
LE: loop exit
PB: predicated region body
PF: predicated region fallthrough
CT: control target
= control target key end

     0   :  { %11 = vsyncpa [#allocation3], 0  ;;  %s4192_s0 = inlined_call_operand.hbm [shape: f32[2,16,64], index: 0, kind: input, shape index: {}]   ;;  %s4193_s1 = inlined_call_operand.hbm [shape: f32[64,64], index: 1, kind: input, shape index: {}]   ;;  %s4194_s2 = inlined_call_operand.hbm [shape: f32[64,64], index: 2, kind: input, shape index: {}]   ;;  %s4195_s3 = inlined_call_operand.hbm [shape: f32[64,64], index: 3, kind: input, shape index: {}]   ;;  %s4196_s4 = inlined_call_operand.hbm [shape: f32[128,128], index: 4, kind: input, shape index: {}]   ;;  %s4197_s5 = inlined_call_operand.vmem [shape: f32[1,128], index: 5, kind: input, shape index: {}]   ;;  %s4198_s6 = inlined_call_operand.hbm [shape: f32[2,16,128], index: 6, kind: output, shape index: {}]  }
   0x1   :  { %13 = vsyncpa [#allocation3 + $0x1], 0 }
   0x2   :  { %14 = vsyncpa [#allocation6], 0 }
   0x3   :  { %15 = vsyncpa [#allocation9], 0 }
   0x4   :  { %16 = vsyncpa [#allocation4], 0 }
   0x5   :  { %18 = vsyncpa [#allocation4 + $0x1], 0  ;;  %s3601_s21 = smov 0   ;;  %s3603_s22 = smov 0  }
   0x6   :  { %s3605_s23 = smov 0   ;;  %s3607_s24 = smov 0  }
   0x7 LB: > { %s3622_s25 = sadd.s32 4294967295, %s3540_s24   ;;  %s2490_s26 = sadd.s32 4294967294, %s3540_s24   ;;  %s3540_s24 = sphi %s3607_s24, %s4223_s24   ;;  %s3536_s23 = sphi %s3605_s23, %s4222_s23   ;;  %s3532_s22 = sphi %s3603_s22, %s4221_s22   ;;  %s3528_s21 = sphi %s3601_s21, %s4220_s21  }
   0x8   : > { %p44_p0 = scmp.ne.s32.totalorder %s3532_s22, %s3528_s21  ;;  %p4199_p1 = scmp.eq.s32.totalorder %s3622_s25, 0 }
   0x9   : > { %p179_p3 = scmp.eq.s32.totalorder %s2490_s26, 1  ;;  %p2491_p5 = scmp.ge.s32.totalorder %s3540_s24, 1 }
   0xa   : > { %p3631_p4 = por %p4199_p1, %p44_p0  ;;  %p186_p7 = scmp.lt.s32.totalorder %s3540_s24, 3 }
   0xb   : > { %p3636_p6 = por %p179_p3, %p44_p0  ;;  %s3542_s30 = smov [#allocation5]  }
   0xc   : > { %s4202_s27 = scalar_select %p3631_p4, 1, 0 }
   0xd   : > { %s4203_s28 = scalar_select %p3636_p6, 1, 0 }
   0xe   : > { %p3641_p8 = pnand %p2491_p5, %p186_p7  ;;  %s198_s7 = sshll.u32 %s3542_s30, 4  ;;  %s3645_s7 = int_to_ptr.vmem [resolvable:$true] %s198_s7 }
   0xf   : > { %s3543_s9 = smov [#allocation8]   ;;  %s3544_s11 = smov [#allocation7]  }
  0x10   : > { %s4204_s29 = scalar_select %p3641_p8, 1, 0 }
  0x11   : > { %p3065_p9 = pneg %p3641_p8  ;;  %s224_s10 = sshll.u32 %s3543_s9, 4  ;;  %s3656_s10 = int_to_ptr.vmem [resolvable:$true] %s224_s10 }
  0x12   : > { %s3658_s12 = sshll.u32 %s3544_s11, 4  ;;  %s3324_s15 = scalar_lea.hbm %s4193_s1, 1024  ;;  %s212_s12 = int_to_ptr.vmem [resolvable:$true] %s3658_s12 }
  0x13   : > { %p3652_p11 = pnand %p3065_p9, %p4199_p1  ;;  %p3325_p12 = scmp.ne.s32.totalorder %s4193_s1, %s3324_s15 }
  0x14   : > { %p3331_p5 = scmp.lt.u32.totalorder %s3324_s15, %s4193_s1 }
  0x15   : > { %p3668_p13 = pneg %p3652_p11 }
  0x17   : > { %p3327_p0 = pnand %p3668_p13, %p3325_p12 }
  0x19   : > { %p3328_p3 = pneg %p3327_p0 }
  0x1b   : > { %p3333_p7 = pnand %p3331_p5, %p3328_p3 }
  0x1d   : > { %3336 = shalt.err (!%p3333_p7)
}
  0x1e   : > { %s3337_s26 = scalar_lea.vmem %s3645_s7, 1024  ;;  %p3345_p2 = scmp.lt.s32.totalorder %s3645_s7, %s3645_s7 }
  0x1f   : > { %p3338_p9 = scmp.ne.s32.totalorder %s3645_s7, %s3337_s26  ;;  %p3346_p6 = scmp.lt.s32.totalorder %s3337_s26, %s3337_s26 }
  0x21   : > { %p3340_p10 = pnand %p3338_p9, %p3668_p13  ;;  %p3347_p12 = por %p3346_p6, %p3345_p2 }
  0x23   : > { %p3341_p1 = pneg %p3340_p10 }
  0x25   : > { %p3348_p0 = pnand %p3347_p12, %p3341_p1 }
  0x27   : > { %3351 = shalt.err (!%p3348_p0)
}
  0x28   : > { %s3545_s30 = smov 128   ;;  %s3546_s9 = smov 8  }
  0x29   : > { %3068 = dma.hbm_to_vmem [thread:$0]  (!%p3652_p11), %s4193_s1, 1024, %s3645_s7, [#allocation6], %s3545_s30, %s3545_s30, %s3546_s9  }
  0x2a   : > { %s3352_s16 = scalar_lea.hbm %s4195_s3, 1024 }
  0x2b   : > { %p3353_p1 = scmp.ne.s32.totalorder %s4195_s3, %s3352_s16  ;;  %p3359_p10 = scmp.lt.u32.totalorder %s3352_s16, %s4195_s3 }
  0x2d   : > { %p3355_p2 = pnand %p3353_p1, %p3668_p13 }
  0x2f   : > { %p3356_p6 = pneg %p3355_p2 }
  0x31   : > { %p3361_p3 = pnand %p3359_p10, %p3356_p6 }
  0x33   : > { %3364 = shalt.err (!%p3361_p3)
}
  0x34   : > { %s3365_s7 = scalar_lea.vmem %s3656_s10, 1024  ;;  %p3373_p12 = scmp.lt.s32.totalorder %s3656_s10, %s3656_s10 }
  0x35   : > { %p3366_p5 = scmp.ne.s32.totalorder %s3656_s10, %s3365_s7  ;;  %p3374_p0 = scmp.lt.s32.totalorder %s3365_s7, %s3365_s7 }
  0x37   : > { %p3368_p7 = pnand %p3366_p5, %p3668_p13  ;;  %p3375_p1 = por %p3374_p0, %p3373_p12 }
  0x39   : > { %p3369_p9 = pneg %p3368_p7 }
  0x3b   : > { %p3376_p2 = pnand %p3375_p1, %p3369_p9 }
  0x3d   : > { %3379 = shalt.err (!%p3376_p2)
}
  0x3e   : > { %3074 = dma.hbm_to_vmem [thread:$0]  (!%p3652_p11), %s4195_s3, 1024, %s3656_s10, [#allocation9], %s3545_s30, %s3545_s30, %s3546_s9  }
  0x3f   : > { %s3380_s16 = scalar_lea.hbm %s4194_s2, 1024 }
  0x40   : > { %p3381_p6 = scmp.ne.s32.totalorder %s4194_s2, %s3380_s16  ;;  %p3387_p5 = scmp.lt.u32.totalorder %s3380_s16, %s4194_s2 }
  0x42   : > { %p3383_p10 = pnand %p3381_p6, %p3668_p13 }
  0x44   : > { %p3384_p3 = pneg %p3383_p10 }
  0x46   : > { %p3389_p7 = pnand %p3387_p5, %p3384_p3 }
  0x48   : > { %3392 = shalt.err (!%p3389_p7)
}
  0x49   : > { %s3393_s7 = scalar_lea.vmem %s212_s12, 1024  ;;  %p3401_p1 = scmp.lt.s32.totalorder %s212_s12, %s212_s12 }
  0x4a   : > { %p3394_p9 = scmp.ne.s32.totalorder %s212_s12, %s3393_s7  ;;  %p3402_p2 = scmp.lt.s32.totalorder %s3393_s7, %s3393_s7 }
  0x4c   : > { %p3396_p12 = pnand %p3394_p9, %p3668_p13  ;;  %p3403_p4 = por %p3402_p2, %p3401_p1 }
  0x4e   : > { %p3397_p0 = pneg %p3396_p12 }
  0x50   : > { %p3404_p8 = pnand %p3403_p4, %p3397_p0 }
  0x52   : > { %3407 = shalt.err (!%p3404_p8)
}
  0x53   : > { %3071 = dma.hbm_to_vmem [thread:$0]  (!%p3652_p11), %s4194_s2, 1024, %s212_s12, [#allocation6], %s3545_s30, %s3545_s30, %s3546_s9  }
  0x54   : > { %s3547_s13 = smov [#allocation10]   ;;  %s3408_s17 = scalar_lea.hbm %s4196_s4, 2048 }
  0x55   : > { %s237_s14 = sshll.u32 %s3547_s13, 4  ;;  %p3409_p4 = scmp.ne.s32.totalorder %s4196_s4, %s3408_s17  ;;  %s238_s14 = int_to_ptr.vmem [resolvable:$true] %s237_s14 }
  0x56   : > { %p3415_p10 = scmp.lt.u32.totalorder %s3408_s17, %s4196_s4 }
  0x57   : > { %p3411_p8 = pnand %p3409_p4, %p3668_p13 }
  0x59   : > { %p3412_p6 = pneg %p3411_p8 }
  0x5b   : > { %p3417_p3 = pnand %p3415_p10, %p3412_p6 }
  0x5d   : > { %3420 = shalt.err (!%p3417_p3)
}
  0x5e   : > { %s3421_s12 = scalar_lea.vmem %s238_s14, 2048  ;;  %p3429_p12 = scmp.lt.s32.totalorder %s238_s14, %s238_s14 }
  0x5f   : > { %p3422_p5 = scmp.ne.s32.totalorder %s238_s14, %s3421_s12  ;;  %p3430_p0 = scmp.lt.s32.totalorder %s3421_s12, %s3421_s12 }
  0x61   : > { %p3424_p7 = pnand %p3422_p5, %p3668_p13  ;;  %p3431_p1 = por %p3430_p0, %p3429_p12 }
  0x63   : > { %p3425_p9 = pneg %p3424_p7 }
  0x65   : > { %p3432_p2 = pnand %p3431_p1, %p3425_p9 }
  0x67   : > { %3435 = shalt.err (!%p3432_p2)
}
  0x68   : > { %3077 = dma.hbm_to_vmem [thread:$0]  (!%p3652_p11), %s4196_s4, 2048, %s238_s14, [#allocation9], %s3545_s30, %s3545_s30, %s3546_s9  }
  0x69   : > { %s3762_s18 = sadd.s32 1, %s3540_s24   ;;  %s31_s8 = sadd.s32 1, %s3536_s23 }
  0x6a   : > { %s28_s13 = ssub.s32 %s3540_s24, %s3762_s18  ;;  %p38_p13 = scmp.ne.s32.totalorder %s3536_s23, %s3532_s22 }
  0x6b   : > { %p29_p4 = scmp.eq.s32.totalorder %s28_s13, 0  ;;  %p39_p8 = scmp.eq.s32.totalorder %s3540_s24, 0 }
  0x6c   : > { %p4207_p6 = scmp.eq.s32.totalorder %s3622_s25, 1  ;;  %p3090_p3 = scmp.lt.s32.totalorder %s3540_s24, 2 }
  0x6d   : > { %s3778_s16 = scalar_select %p29_p4, %s3536_s23, %s31_s8  }
  0x6e   : > { %p3772_p10 = por %p4207_p6, %p38_p13  ;;  %p40_p5 = por %p39_p8, %p38_p13 }
  0x6f   : > { %s254_s17 = sand.u32 1, %s3536_s23   ;;  %s2567_s14 = sshll.u32 %s3540_s24, 8 }
  0x70   : > { %s2497_s19 = sshll.u32 %s254_s17, 4  ;;  %s3785_s7 = scalar_lea.hbm %s4192_s0, %s2567_s14 }
  0x71   : > { %s258_s12 = scalar_lea.vmem [#allocation2], %s2497_s19  ;;  %p3789_p11 = pnand %p3090_p3, %p40_p5 }
  0x72   : > { %s265_s10 = sshll.u32 %s258_s12, 4  ;;  %s3793_s8 = scalar_lea.sflag [#allocation3], %s254_s17  ;;  %s3787_s10 = int_to_ptr.vmem [resolvable:$true] %s265_s10 }
  0x73   : > { %s3436_s13 = scalar_lea.hbm %s3785_s7, 256  ;;  %p3438_p9 = pneg %p3789_p11 }
  0x74   : > { %p3437_p7 = scmp.ne.s32.totalorder %s3785_s7, %s3436_s13  ;;  %s3441_s20 = scalar_lea.hbm %s4192_s0, 512 }
  0x75   : > { %p3442_p1 = scmp.lt.u32.totalorder %s3785_s7, %s4192_s0  ;;  %p3443_p2 = scmp.lt.u32.totalorder %s3441_s20, %s3436_s13 }
  0x76   : > { %p3439_p12 = pnand %p3438_p9, %p3437_p7  ;;  %p3445_p4 = scmp.lt.u32.totalorder %s3436_s13, %s3785_s7 }
  0x77   : > { %p3444_p13 = por %p3443_p2, %p3442_p1 }
  0x78   : > { %p3440_p0 = pneg %p3439_p12 }
  0x79   : > { %p3446_p8 = por %p3445_p4, %p3444_p13 }
  0x7b   : > { %p3447_p6 = pnand %p3446_p8, %p3440_p0 }
  0x7d   : > { %3450 = shalt.err (!%p3447_p6)
}
  0x7e   : > { %s3451_s17 = scalar_lea.vmem %s3787_s10, 256  ;;  %s3548_s19 = smov [#allocation2]  }
  0x7f   : > { %p3452_p3 = scmp.ne.s32.totalorder %s3787_s10, %s3451_s17  ;;  %s3456_s14 = sshll.u32 %s3548_s19, 4  ;;  %s3457_s14 = int_to_ptr.vmem [resolvable:$false] %s3456_s14 }
  0x80   : > { %s3458_s26 = scalar_lea.vmem %s3457_s14, 512  ;;  %p3459_p12 = scmp.lt.s32.totalorder %s3787_s10, %s3457_s14 }
  0x81   : > { %p3454_p5 = pnand %p3452_p3, %p3438_p9  ;;  %p3460_p1 = scmp.lt.s32.totalorder %s3458_s26, %s3451_s17 }
  0x83   : > { %p3455_p7 = pneg %p3454_p5  ;;  %p3461_p2 = por %p3460_p1, %p3459_p12 }
  0x85   : > { %p3462_p13 = pnand %p3461_p2, %p3455_p7 }
  0x87   : > { %3465 = shalt.err (!%p3462_p13)
}
  0x88   : > { %3081 = dma.hbm_to_vmem [thread:$0]  (!%p3789_p11), %s3785_s7, 256, %s3787_s10, %s3793_s8, %s3545_s30, %s3545_s30, %s3546_s9  }
  0x89   : > { %p4210_p9 = scmp.ne.s32.totalorder %s4204_s29, 0 }
  0x8a   : > { %s3827_s13 = sand.u32 (!%p4210_p9), 1, %s3532_s22   ;;  %p4211_p0 = scmp.ne.s32.totalorder (!%p4210_p9), %s4202_s27, 0 }
  0x8b   : > { %277 = sbr.rel (%p4210_p9) target bundleno = 1653 (0x675), region = 44  ;;  %s2501_s20 = sshll.u32 (!%p4210_p9), %s3827_s13, 4 }
  0x8c   : > { %s280_s12 = scalar_lea.sflag (!%p4210_p9), [#allocation3], %s3827_s13  ;;  %s3833_s11 = scalar_lea.vmem (!%p4210_p9), [#allocation2], %s2501_s20 }
  0x92   : > { %3511 = dma.done.wait (%p4211_p0), %s280_s12, 256  }
  0x93   : > { %3513 = vsyncadd (%p4211_p0), %s280_s12, 4294967040  ;;  %p4212_p11 = scmp.eq.s32.totalorder %s3622_s25, 0 }
  0x95   : > { %3515 = dma.done.wait (%p4212_p11), [#allocation6], 2048   ;;  %p4213_p4 = pmov %p4212_p11 }
  0x97   : > { %3517 = vsyncadd (%p4213_p4), [#allocation6], 4294965248  ;;  %p4214_p8 = pmov %p4213_p4 }
  0x98   : > { %p4215_p6 = pmov %p4213_p4 }
  0x99   : > { %3519 = dma.done.wait (%p4214_p8), [#allocation9], 3072  }
  0x9a   : > { %3521 = vsyncadd (%p4215_p6), [#allocation9], 4294964224  ;;  %v330_v0 = vld [vmem:[#allocation5] sm:$0xff]  ;;  %v331_v1 = vld [vmem:[#allocation5 + $0x8] sm:$0xff]  ;;  %vm338_vm0 = vcmask 523264   ;;  %vm692_vm1 = vcmask 64512  }
  0x9b   : > { %v332_v2 = vld [vmem:[#allocation5 + $0x10] sm:$0xff]  ;;  %v2885_v3 = vpack.c.bf16 %v331_v1, %v330_v0  ;;  %v333_v4 = vld [vmem:[#allocation5 + $0x18] sm:$0xff]  ;;  %v334_v6 = vld [vmem:[#allocation5 + $0x20] sm:$0xff]  ;;  %s3549_s27 = smov 120   ;;  %s3550_s29 = smov 112   ;;  %vm1357_vm3 = vcmask 130048  }
  0x9c   : > { %v2889_v5 = vpack.c.bf16 %v333_v4, %v332_v2  ;;  %v335_v7 = vld [vmem:[#allocation5 + $0x28] sm:$0xff]  ;;  %v328_v8 = vld [vmem:[%s3833_s11] sm:$0xff]  ;;  %v337_v11 = vld [vmem:[#allocation5 + $0x38] sm:$0xff]  ;;  %s3551_s30 = smov 104   ;;  %s3552_s9 = smov 96   ;;  %vm2248_vm4 = vcmask 195584  }
  0x9d   : > { %2886 = vmatprep.subr.bf16.mxu1 %v2885_v3  ;;  %2697 = vmatprep.mubr.msk.f32.mxu1 %vm338_vm0, %v328_v8  ;;  %v2893_v9 = vpack.c.bf16 %v335_v7, %v334_v6  ;;  %v336_v10 = vld [vmem:[#allocation5 + $0x30] sm:$0xff]  ;;  %v505_v12 = vld [vmem:[#allocation8] sm:$0xff]  ;;  %v506_v13 = vld [vmem:[#allocation8 + $0x8] sm:$0xff]  ;;  %s3553_s7 = smov 88   ;;  %s3554_s10 = smov 80   ;;  %vm2251_vm5 = vcmask 261120  }
  0x9e   : > { %2888 = vmatpush3.bf16.msra.mxu1 %v2885_v3  ;;  %2735 = vmatprep.mubr.msk.f32.mxu0 %vm338_vm0, %v328_v8  ;;  %v507_v14 = vld [vmem:[#allocation8 + $0x10] sm:$0xff]  ;;  %v2917_v15 = vpack.c.bf16 %v506_v13, %v505_v12  ;;  %v508_v16 = vld [vmem:[#allocation8 + $0x18] sm:$0xff]  ;;  %v509_v18 = vld [vmem:[#allocation8 + $0x20] sm:$0xff]  ;;  %v2897_v20 = vpack.c.bf16 %v337_v11, %v336_v10  ;;  %s3555_s8 = smov 72   ;;  %s3556_s17 = smov 8   ;;  %vm2254_vm6 = vcmask 326656  }
  0x9f   : > { %2890 = vmatprep.subr.bf16.mxu1 %v2889_v5  ;;  %v2921_v17 = vpack.c.bf16 %v508_v16, %v507_v14  ;;  %v510_v19 = vld [vmem:[#allocation8 + $0x28] sm:$0xff]  ;;  %v422_v21 = vld [vmem:[#allocation7] sm:$0xff]  ;;  %v511_v24 = vld [vmem:[#allocation8 + $0x30] sm:$0xff]  ;;  %s3557_s19 = smov 16   ;;  %s3558_s14 = smov 24   ;;  %vm2257_vm7 = vcmask 392192  }
  0xa0   : > { %2918 = vmatprep.subr.bf16.mxu0 %v2917_v15  ;;  %v423_v22 = vld [vmem:[#allocation7 + $0x8] sm:$0xff]  ;;  %v2925_v23 = vpack.c.bf16 %v510_v19, %v509_v18  ;;  %v512_v25 = vld [vmem:[#allocation8 + $0x38] sm:$0xff]  ;;  %v424_v27 = vld [vmem:[#allocation7 + $0x10] sm:$0xff]  ;;  %s3559_s26 = smov 32   ;;  %s3560_s12 = smov 40   ;;  %vm2260_vm8 = vcmask 457728  }
  0xa1   : > { %2920 = vmatpush3.bf16.msra.mxu0 %v2917_v15  ;;  %v2901_v26 = vpack.c.bf16 %v423_v22, %v422_v21  ;;  %v425_v28 = vld [vmem:[#allocation7 + $0x18] sm:$0xff]  ;;  %v2929_v29 = vpack.c.bf16 %v512_v25, %v511_v24  ;;  %v426_v32 = vld [vmem:[#allocation7 + $0x20] sm:$0xff]  ;;  %v427_v33 = vld [vmem:[#allocation7 + $0x28] sm:$0xff] }
  0xa2   : > { %2892 = vmatpush3.bf16.msra.mxu1 %v2889_v5  ;;  %2922 = vmatprep.subr.bf16.mxu0 %v2921_v17  ;;  %v329_v30 = vld [vmem:[%s3833_s11 + $0x8] sm:$0xff]  ;;  %v2905_v31 = vpack.c.bf16 %v425_v28, %v424_v27  ;;  %v2909_v34 = vpack.c.bf16 %v427_v33, %v426_v32  ;;  %v428_v35 = vld [vmem:[#allocation7 + $0x30] sm:$0xff]  ;;  %vm3861_vm2 = vmpackc.low %vm692_vm1, %vm692_vm1  ;;  %s3561_s11 = smov 48  }
  0xa3   : > { %2894 = vmatprep.subr.bf16.mxu1 %v2893_v9  ;;  %v429_v36 = vld [vmem:[#allocation7 + $0x38] sm:$0xff] }
  0xa4   : > { %v2913_v37 = vpack.c.bf16 %v429_v36, %v428_v35 }
  0xa5   : > { %2924 = vmatpush3.bf16.msra.mxu0 %v2921_v17 }
  0xa6   : > { %2896 = vmatpush3.bf16.msra.mxu1 %v2893_v9  ;;  %2926 = vmatprep.subr.bf16.mxu0 %v2925_v23 }
  0xa7   : > { %2898 = vmatprep.subr.bf16.mxu1 %v2897_v20 }
  0xa9   : > { %2928 = vmatpush3.bf16.msra.mxu0 %v2925_v23 }
  0xaa   : > { %2900 = vmatpush3.bf16.msra.mxu1 %v2897_v20  ;;  %2930 = vmatprep.subr.bf16.mxu0 %v2929_v29 }
  0xab   : > { %2902 = vmatprep.subr.bf16.mxu1 %v2901_v26 }
  0xad   : > { %2698 = vmatmul.mubr.msk.f32.vlgmr.msra.gmra.mrb[0].mxu1 %vm338_vm0, %v329_v30  ;;  %2932 = vmatpush3.bf16.msra.mxu0 %v2929_v29 }
  0xae   : > { %2904 = vmatpush3.bf16.msra.mxu1 %v2901_v26  ;;  %2716 = vmatprep.mubr.msk.f32.mxu1 %vm338_vm0, %v328_v8 }
  0xaf   : > { %2906 = vmatprep.subr.bf16.mxu1 %v2905_v31 }
  0xb0   : > { %2736 = vmatmul.mubr.msk.f32.vlgmr.msra.gmra.mrb[0].mxu0 %vm338_vm0, %v329_v30 }
  0xb2   : > { %2908 = vmatpush3.bf16.msra.mxu1 %v2905_v31 }
  0xb3   : > { %2910 = vmatprep.subr.bf16.mxu1 %v2909_v34 }
  0xb6   : > { %2912 = vmatpush3.bf16.msra.mxu1 %v2909_v34 }
  0xb7   : > { %2914 = vmatprep.subr.bf16.mxu1 %v2913_v37 }
  0xba   : > { %2916 = vmatpush3.bf16.msra.mxu1 %v2913_v37 }
  0xbd   : > { %2717 = vmatmul.mubr.msk.f32.vlgmr.msra.gmra.mrb[2].mxu1 %vm338_vm0, %v329_v30 }
 0x180   : > { %v2699_v38 = vpop.f32.mrb[0].mxu1 }
 0x181   : > { %v421_v39 = vmul.f32 0.35355338, %v2699_v38  ;;  %v411_v40 = vpop.f32.mrb[1].mxu1 }
 0x182   : > { %v420_v41 = vmul.f32 0.35355338, %v411_v40 }
 0x183   : > { %592 = vrot.lane.b32.xlu0 %v421_v39, %s3549_s27  ;;  %v2737_v47 = vpop.f32.mrb[0].mxu0 }
 0x184   : > { %590 = vrot.lane.b32.xlu1 %v420_v41, %s3549_s27  ;;  %2742 = vmatprep.mubr.msk.f32.mxu1 %vm692_vm1, %v420_v41  ;;  %v579_v48 = vpop.f32.mrb[1].mxu0 }
 0x185   : > { %v3881_v49 = vpack.i.bf16 %v2737_v47, %v579_v48  ;;  %v3892_v50 = vpack.c.bf16 %v2737_v47, %v579_v48 }
 0x188   : > { %594 = vrot.lane.b32.xlu1 %v420_v41, %s3550_s29 }
 0x190   : > { %v2718_v42 = vpop.f32.mrb[2].mxu1 }
 0x191   : > { %v496_v43 = vpop.f32.mrb[3].mxu1 }
 0x192   : > { %v3150_v45 = vpack.i.bf16 %v2718_v42, %v496_v43  ;;  %v2933_v46 = vpack.c.bf16 %v2718_v42, %v496_v43 }
 0x194   : > { %3151 = vrot.lane.b32.xlu0 %v3150_v45, %s3549_s27  ;;  %2935 = vmatprep.subr.msk.bf16.mxu1 %vm3861_vm2, %v2933_v46 }
 0x195   : > { %3161 = vrot.lane.b32.xlu1 %v3150_v45, %s3551_s30  ;;  %2938 = vmatpush3.bf16.xpose.msk.msra.mxu1 %vm3861_vm2, %v2933_v46 }
 0x198   : > { %596 = vrot.lane.b32.xlu0 %v421_v39, %s3550_s29 }
 0x199   : > { %598 = vrot.lane.b32.xlu1 %v420_v41, %s3551_s30 }
 0x19c   : > { %3156 = vrot.lane.b32.xlu0 %v3150_v45, %s3550_s29  ;;  %2743 = vmatmul.mubr.msk.f32.vlgmr.msra.gmra.mrb[4].mxu1 %vm692_vm1, %v421_v39 }
 0x19d   : > { %3166 = vrot.lane.b32.xlu1 %v3150_v45, %s3552_s9 }
 0x1a0   : > { %600 = vrot.lane.b32.xlu0 %v421_v39, %s3551_s30 }
 0x1a1   : > { %602 = vrot.lane.b32.xlu1 %v420_v41, %s3552_s9 }
 0x1a4   : > { %3171 = vrot.lane.b32.xlu0 %v3150_v45, %s3553_s7 }
 0x1a5   : > { %3176 = vrot.lane.b32.xlu1 %v3150_v45, %s3554_s10 }
 0x1a8   : > { %604 = vrot.lane.b32.xlu0 %v421_v39, %s3552_s9 }
 0x1a9   : > { %606 = vrot.lane.b32.xlu1 %v420_v41, %s3553_s7 }
 0x1ac   : > { %3181 = vrot.lane.b32.xlu0 %v3150_v45, %s3555_s8 }
 0x1ad   : > { %610 = vrot.lane.b32.xlu1 %v420_v41, %s3554_s10 }
 0x1b0   : > { %608 = vrot.lane.b32.xlu0 %v421_v39, %s3553_s7 }
 0x1b1   : > { %614 = vrot.lane.b32.xlu1 %v420_v41, %s3555_s8 }
 0x1b4   : > { %612 = vrot.lane.b32.xlu0 %v421_v39, %s3554_s10 }
 0x1b5   : > { %3191 = vrot.lane.b32.xlu1 %v3881_v49, %s3550_s29  ;;  %s3563_s29 = smov 64  }
 0x1b8   : > { %616 = vrot.lane.b32.xlu0 %v421_v39, %s3555_s8 }
 0x1b9   : > { %3196 = vrot.lane.b32.xlu1 %v3881_v49, %s3551_s30 }
 0x1bc   : > { %3186 = vrot.lane.b32.xlu0 %v3881_v49, %s3549_s27  ;;  %s3562_s27 = smov 56  }
 0x1f5   : > { %v593_v53 = vpop.permute.xlu0 %592 }
 0x1f6   : > { %v591_v51 = vpop.permute.xlu1 %590 }
 0x1f7   : > { %2749 = vmatprep.mubr.msk.f32.mxu1 %vm692_vm1, %v591_v51 }
 0x1fa   : > { %v595_v52 = vpop.permute.xlu1 %594 }
 0x1fb   : > { %2756 = vmatprep.mubr.msk.f32.mxu0 %vm692_vm1, %v595_v52 }
 0x206   : > { %v3152_v54 = vpop.permute.xlu0 %3151 }
 0x207   : > { %v3154_v55 = vunpack.i.h.bf16 %v3152_v54  ;;  %v3153_v56 = vunpack.i.l.bf16 %v3152_v54  ;;  %v3162_v57 = vpop.permute.xlu1 %3161 }
 0x208   : > { %v3164_v58 = vunpack.i.h.bf16 %v3162_v57  ;;  %v3163_v59 = vunpack.i.l.bf16 %v3162_v57 }
 0x209   : > { %v2939_v60 = vpack.c.bf16 %v3154_v55, %v3153_v56 }
 0x20a   : > { %v597_v61 = vpop.permute.xlu0 %596  ;;  %v2951_v62 = vpack.c.bf16 %v3164_v58, %v3163_v59 }
 0x20b   : > { %v599_v63 = vpop.permute.xlu1 %598  ;;  %2941 = vmatprep.subr.msk.bf16.mxu1 %vm3861_vm2, %v2939_v60 }
 0x20c   : > { %2944 = vmatpush3.bf16.xpose.msk.msra.mxu1 %vm3861_vm2, %v2939_v60 }
 0x20d   : > { %2953 = vmatprep.subr.msk.bf16.mxu1 %vm3861_vm2, %v2951_v62 }
 0x20e   : > { %v3157_v0 = vpop.permute.xlu0 %3156 }
 0x20f   : > { %v3159_v1 = vunpack.i.h.bf16 %v3157_v0  ;;  %v3158_v2 = vunpack.i.l.bf16 %v3157_v0  ;;  %v3167_v3 = vpop.permute.xlu1 %3166 }
 0x210   : > { %v3169_v4 = vunpack.i.h.bf16 %v3167_v3  ;;  %v3168_v5 = vunpack.i.l.bf16 %v3167_v3 }
 0x211   : > { %v2945_v6 = vpack.c.bf16 %v3159_v1, %v3158_v2 }
 0x212   : > { %v601_v7 = vpop.permute.xlu0 %600  ;;  %v2957_v8 = vpack.c.bf16 %v3169_v4, %v3168_v5 }
 0x213   : > { %v603_v9 = vpop.permute.xlu1 %602  ;;  %2750 = vmatmul.mubr.msk.f32.vlgmr.msra.gmra.mrb[6].mxu1 %vm692_vm1, %v593_v53  ;;  %2947 = vmatprep.subr.msk.bf16.mxu0 %vm3861_vm2, %v2945_v6 }
 0x214   : > { %2950 = vmatpush3.bf16.xpose.msk.msra.mxu0 %vm3861_vm2, %v2945_v6  ;;  %2956 = vmatpush3.bf16.xpose.msk.msra.mxu1 %vm3861_vm2, %v2951_v62 }
 0x215   : > { %2763 = vmatprep.mubr.msk.f32.mxu1 %vm692_vm1, %v599_v63  ;;  %2959 = vmatprep.subr.msk.bf16.mxu0 %vm3861_vm2, %v2957_v8 }
 0x216   : > { %v3172_v10 = vpop.permute.xlu0 %3171 }
 0x217   : > { %v3174_v11 = vunpack.i.h.bf16 %v3172_v10  ;;  %v3173_v12 = vunpack.i.l.bf16 %v3172_v10  ;;  %v3177_v13 = vpop.permute.xlu1 %3176 }
 0x218   : > { %v3179_v14 = vunpack.i.h.bf16 %v3177_v13  ;;  %v3178_v15 = vunpack.i.l.bf16 %v3177_v13 }
 0x219   : > { %v2963_v16 = vpack.c.bf16 %v3174_v11, %v3173_v12 }
 0x21a   : > { %v605_v17 = vpop.permute.xlu0 %604  ;;  %v2969_v19 = vpack.c.bf16 %v3179_v14, %v3178_v15 }
 0x21b   : > { %v607_v18 = vpop.permute.xlu1 %606  ;;  %2757 = vmatmul.mubr.msk.f32.vlgmr.msra.gmra.mrb[2].mxu0 %vm692_vm1, %v597_v61  ;;  %2764 = vmatmul.mubr.msk.f32.vlgmr.msra.gmra.mrb[8].mxu1 %vm692_vm1, %v601_v7 }
 0x21c   : > { %2965 = vmatprep.subr.msk.bf16.mxu1 %vm3861_vm2, %v2963_v16  ;;  %2962 = vmatpush3.bf16.xpose.msk.msra.mxu0 %vm3861_vm2, %v2957_v8 }
 0x21d   : > { %2770 = vmatprep.mubr.msk.f32.mxu0 %vm692_vm1, %v603_v9  ;;  %2968 = vmatpush3.bf16.xpose.msk.msra.mxu1 %vm3861_vm2, %v2963_v16 }
 0x21e   : > { %2777 = vmatprep.mubr.msk.f32.mxu1 %vm692_vm1, %v607_v18  ;;  %2971 = vmatprep.subr.msk.bf16.mxu0 %vm3861_vm2, %v2969_v19  ;;  %v3182_v20 = vpop.permute.xlu0 %3181 }
 0x21f   : > { %v3184_v21 = vunpack.i.h.bf16 %v3182_v20  ;;  %v3183_v22 = vunpack.i.l.bf16 %v3182_v20  ;;  %v611_v23 = vpop.permute.xlu1 %610 }
 0x221   : > { %v2975_v24 = vpack.c.bf16 %v3184_v21, %v3183_v22 }
 0x222   : > { %v609_v25 = vpop.permute.xlu0 %608 }
 0x223   : > { %v615_v26 = vpop.permute.xlu1 %614  ;;  %2771 = vmatmul.mubr.msk.f32.vlgmr.msra.gmra.mrb[4].mxu0 %vm692_vm1, %v605_v17  ;;  %2977 = vmatprep.subr.msk.bf16.mxu1 %vm3861_vm2, %v2975_v24 }
 0x224   : > { %2778 = vmatmul.mubr.msk.f32.vlgmr.msra.gmra.mrb[10].mxu1 %vm692_vm1, %v609_v25  ;;  %2974 = vmatpush3.bf16.xpose.msk.msra.mxu0 %vm3861_vm2, %v2969_v19 }
 0x225   : > { %2784 = vmatprep.mubr.msk.f32.mxu0 %vm692_vm1, %v611_v23  ;;  %2980 = vmatpush3.bf16.xpose.msk.msra.mxu1 %vm3861_vm2, %v2975_v24 }
 0x226   : > { %2791 = vmatprep.mubr.msk.f32.mxu1 %vm692_vm1, %v615_v26  ;;  %v613_v27 = vpop.permute.xlu0 %612  ;;  %2982 = vmatprep.subr.bf16.mxu0 %v3892_v50 }
 0x227   : > { %v3192_v33 = vpop.permute.xlu1 %3191 }
 0x228   : > { %v3194_v34 = vunpack.i.h.bf16 %v3192_v33  ;;  %v3193_v35 = vunpack.i.l.bf16 %v3192_v33 }
 0x22a   : > { %v617_v28 = vpop.permute.xlu0 %616  ;;  %v3946_v37 = vpack.c.bf16 %v3194_v34, %v3193_v35 }
 0x22b   : > { %2785 = vmatmul.mubr.msk.f32.vlgmr.msra.gmra.mrb[6].mxu0 %vm692_vm1, %v613_v27  ;;  %v3197_v40 = vpop.permute.xlu1 %3196 }
 0x22c   : > { %2792 = vmatmul.mubr.msk.f32.vlgmr.msra.gmra.mrb[12].mxu1 %vm692_vm1, %v617_v28  ;;  %2984 = vmatpush3.bf16.msra.mxu0 %v3892_v50  ;;  %v3199_v42 = vunpack.i.h.bf16 %v3197_v40  ;;  %v3198_v43 = vunpack.i.l.bf16 %v3197_v40 }
 0x22d   : > { %2990 = vmatprep.subr.bf16.mxu0 %v3946_v37 }
 0x22e   : > { %v3187_v36 = vpop.permute.xlu0 %3186  ;;  %v3949_v44 = vpack.c.bf16 %v3199_v42, %v3198_v43 }
 0x22f   : > { %v3189_v38 = vunpack.i.h.bf16 %v3187_v36  ;;  %v3188_v39 = vunpack.i.l.bf16 %v3187_v36 }
 0x231   : > { %v2985_v41 = vpack.c.bf16 %v3189_v38, %v3188_v39 }
 0x233   : > { %2986 = vmatprep.subr.bf16.mxu1 %v2985_v41 }
 0x234   : > { %2988 = vmatpush3.bf16.msra.mxu1 %v2985_v41 }
 0x235   : > { %2994 = vmatprep.subr.bf16.mxu1 %v3949_v44 }
 0x26f   : > { %v3938_v29 = vpop.f32.mrb[4].mxu1 }
 0x270   : > { %v3940_v30 = vpop.f32.mrb[5].mxu1  ;;  %v1361_v31 = vsel %vm1357_vm3, %v3938_v29, -inf }
 0x271   : > { %1362 = vmax.xlane.f32.xlu0 %v1361_v31  ;;  %v1358_v32 = vsel %vm1357_vm3, %v3940_v30, -inf }
 0x272   : > { %1359 = vmax.xlane.f32.xlu1 %v1358_v32 }
 0x2e6   : > { %v2751_v45 = vpop.f32.mrb[6].mxu1 }
 0x2e7   : > { %v850_v46 = vpop.f32.mrb[7].mxu1  ;;  %v1367_v47 = vsel %vm1357_vm3, %v2751_v45, -inf }
 0x2e8   : > { %1368 = vmax.xlane.f32.xlu1 %v1367_v47  ;;  %v1364_v48 = vsel %vm1357_vm3, %v850_v46, -inf }
 0x2e9   : > { %1365 = vmax.xlane.f32.xlu0 %v1364_v48 }
 0x2ee   : > { %v3954_v50 = vpop.f32.mrb[2].mxu0  ;;  %v3956_v51 = vpop.f32.mrb[8].mxu1 }
 0x2ef   : > { %v3958_v52 = vpop.f32.mrb[3].mxu0  ;;  %v3960_v53 = vpop.f32.mrb[9].mxu1  ;;  %v1373_v54 = vsel %vm1357_vm3, %v3954_v50, -inf  ;;  %v1379_v56 = vsel %vm1357_vm3, %v3956_v51, -inf }
 0x2f0   : > { %1374 = vmax.xlane.f32.xlu1 %v1373_v54  ;;  %v1370_v55 = vsel %vm1357_vm3, %v3958_v52, -inf  ;;  %v1376_v57 = vsel %vm1357_vm3, %v3960_v53, -inf }
 0x2f1   : > { %1371 = vmax.xlane.f32.xlu0 %v1370_v55 }
 0x2f4   : > { %1380 = vmax.xlane.f32.xlu1 %v1379_v56 }
 0x2f5   : > { %1377 = vmax.xlane.f32.xlu0 %v1376_v57 }
 0x2f6   : > { %v3970_v58 = vpop.f32.mrb[4].mxu0 }
 0x2f7   : > { %v3972_v59 = vpop.f32.mrb[10].mxu1  ;;  %v3974_v60 = vpop.f32.mrb[5].mxu0  ;;  %v1385_v61 = vsel %vm1357_vm3, %v3970_v58, -inf }
 0x2f8   : > { %v3978_v62 = vpop.f32.mrb[11].mxu1  ;;  %1386 = vmax.xlane.f32.xlu1 %v1385_v61  ;;  %v1382_v63 = vsel %vm1357_vm3, %v3974_v60, -inf  ;;  %v1391_v0 = vsel %vm1357_vm3, %v3972_v59, -inf }
 0x2f9   : > { %1383 = vmax.xlane.f32.xlu0 %v1382_v63  ;;  %v1388_v1 = vsel %vm1357_vm3, %v3978_v62, -inf }
 0x2fc   : > { %1392 = vmax.xlane.f32.xlu1 %v1391_v0 }
 0x2fd   : > { %1389 = vmax.xlane.f32.xlu0 %v1388_v1 }
 0x2fe   : > { %v3986_v2 = vpop.f32.mrb[6].mxu0  ;;  %v1363_v10 = vpop.xlane.xlu0 %1362 }
 0x2ff   : > { %v3988_v3 = vpop.f32.mrb[12].mxu1  ;;  %v3990_v4 = vpop.f32.mrb[7].mxu0  ;;  %v1397_v5 = vsel %vm1357_vm3, %v3986_v2, -inf  ;;  %v1407_v12 = vsub.f32 %v3938_v29, %v1363_v10 }
 0x300   : > { %v3994_v6 = vpop.f32.mrb[13].mxu1  ;;  %1398 = vmax.xlane.f32.xlu1 %v1397_v5  ;;  %v1394_v7 = vsel %vm1357_vm3, %v3990_v4, -inf  ;;  %v1403_v8 = vsel %vm1357_vm3, %v3988_v3, -inf  ;;  %v1360_v11 = vpop.xlane.xlu1 %1359 }
 0x301   : > { %1395 = vmax.xlane.f32.xlu0 %v1394_v7  ;;  %v1400_v9 = vsel %vm1357_vm3, %v3994_v6, -inf  ;;  %v1406_v13 = vsub.f32 %v3940_v30, %v1360_v11  ;;  %v1424_v14 = vmul.f32 1.442695, %v1407_v12 }
 0x303   : > { %v1422_v15 = vmul.f32 1.442695, %v1406_v13  ;;  %3260 = vpow2.f32 %v1424_v14 }
 0x304   : > { %1404 = vmax.xlane.f32.xlu1 %v1403_v8 }
 0x305   : > { %1401 = vmax.xlane.f32.xlu0 %v1400_v9  ;;  %3262 = vpow2.f32 %v1422_v15 }
 0x30d   : > { %v4008_v16 = vpop.eup %3260 }
 0x30e   : > { %v1457_v18 = vsel %vm1357_vm3, %v4008_v16, 0.0 }
 0x30f   : > { %v4010_v17 = vpop.eup %3262 }
 0x310   : > { %v1454_v19 = vsel %vm1357_vm3, %v4010_v17, 0.0 }
 0x315   : > { %3206 = vrot.lane.b32.xlu1 %v3881_v49, %s3553_s7  ;;  %s327_s7 = scalar_lea.vmem [#allocation11], %s2501_s20 }
 0x31b   : > { %3201 = vrot.lane.b32.xlu0 %v3881_v49, %s3552_s9 }
 0x339   : > { %1458 = vadd.xlane.f32.xlu1 %v1457_v18 }
 0x33a   : > { %1455 = vadd.xlane.f32.xlu0 %v1454_v19 }
 0x375   : > { %v1369_v20 = vpop.xlane.xlu1 %1368 }
 0x376   : > { %v1409_v21 = vsub.f32 %v2751_v45, %v1369_v20  ;;  %v1366_v22 = vpop.xlane.xlu0 %1365 }
 0x377   : > { %v1408_v23 = vsub.f32 %v850_v46, %v1366_v22 }
 0x378   : > { %v1428_v24 = vmul.f32 1.442695, %v1409_v21 }
 0x379   : > { %v1426_v25 = vmul.f32 1.442695, %v1408_v23 }
 0x37a   : > { %3264 = vpow2.f32 %v1428_v24 }
 0x37b   : > { %3266 = vpow2.f32 %v1426_v25 }
 0x37d   : > { %v1375_v26 = vpop.xlane.xlu1 %1374 }
 0x37e   : > { %v1411_v27 = vsub.f32 %v3954_v50, %v1375_v26  ;;  %v1372_v28 = vpop.xlane.xlu0 %1371 }
 0x37f   : > { %v1410_v29 = vsub.f32 %v3958_v52, %v1372_v28 }
 0x380   : > { %v1432_v30 = vmul.f32 1.442695, %v1411_v27 }
 0x381   : > { %v1430_v31 = vmul.f32 1.442695, %v1410_v29  ;;  %v1381_v32 = vpop.xlane.xlu1 %1380 }
 0x382   : > { %3268 = vpow2.f32 %v1432_v30  ;;  %v1413_v33 = vsub.f32 %v3956_v51, %v1381_v32  ;;  %v1378_v34 = vpop.xlane.xlu0 %1377 }
 0x383   : > { %3270 = vpow2.f32 %v1430_v31  ;;  %v1412_v35 = vsub.f32 %v3960_v53, %v1378_v34 }
 0x384   : > { %v4020_v36 = vpop.eup %3264  ;;  %v1436_v38 = vmul.f32 1.442695, %v1413_v33 }
 0x385   : > { %v4022_v39 = vpop.eup %3266  ;;  %v1434_v40 = vmul.f32 1.442695, %v1412_v35  ;;  %v1387_v41 = vpop.xlane.xlu1 %1386  ;;  %v1463_v42 = vsel %vm1357_vm3, %v4020_v36, 0.0 }
 0x386   : > { %3272 = vpow2.f32 %v1436_v38  ;;  %v1415_v43 = vsub.f32 %v3970_v58, %v1387_v41  ;;  %v1384_v45 = vpop.xlane.xlu0 %1383  ;;  %1464 = vadd.xlane.f32.xlu1 %v1463_v42  ;;  %v1460_v46 = vsel %vm1357_vm3, %v4022_v39, 0.0 }
 0x387   : > { %3274 = vpow2.f32 %v1434_v40  ;;  %v1414_v47 = vsub.f32 %v3974_v60, %v1384_v45  ;;  %1461 = vadd.xlane.f32.xlu0 %v1460_v46 }
 0x388   : > { %v1440_v48 = vmul.f32 1.442695, %v1415_v43 }
 0x389   : > { %v1438_v50 = vmul.f32 1.442695, %v1414_v47  ;;  %v1393_v51 = vpop.xlane.xlu1 %1392 }
 0x38a   : > { %3276 = vpow2.f32 %v1440_v48  ;;  %v1417_v52 = vsub.f32 %v3972_v59, %v1393_v51  ;;  %v1390_v53 = vpop.xlane.xlu0 %1389 }
 0x38b   : > { %3278 = vpow2.f32 %v1438_v50  ;;  %v1416_v54 = vsub.f32 %v3978_v62, %v1390_v53 }
 0x38c   : > { %v4032_v55 = vpop.eup %3268  ;;  %v1444_v56 = vmul.f32 1.442695, %v1417_v52 }
 0x38d   : > { %v4034_v57 = vpop.eup %3270  ;;  %v1442_v58 = vmul.f32 1.442695, %v1416_v54  ;;  %v1399_v61 = vpop.xlane.xlu1 %1398  ;;  %v1469_v60 = vsel %vm1357_vm3, %v4032_v55, 0.0 }
 0x38e   : > { %3280 = vpow2.f32 %v1444_v56  ;;  %v1419_v63 = vsub.f32 %v3986_v2, %v1399_v61  ;;  %v1396_v0 = vpop.xlane.xlu0 %1395  ;;  %1470 = vadd.xlane.f32.xlu1 %v1469_v60  ;;  %v1466_v59 = vsel %vm1357_vm3, %v4034_v57, 0.0 }
 0x38f   : > { %3282 = vpow2.f32 %v1442_v58  ;;  %v1418_v62 = vsub.f32 %v3990_v4, %v1396_v0  ;;  %1467 = vadd.xlane.f32.xlu0 %v1466_v59 }
 0x390   : > { %v4042_v1 = vpop.eup %3272  ;;  %v1448_v5 = vmul.f32 1.442695, %v1419_v63 }
 0x391   : > { %v4044_v7 = vpop.eup %3274  ;;  %v1446_v8 = vmul.f32 1.442695, %v1418_v62  ;;  %v1405_v9 = vpop.xlane.xlu1 %1404  ;;  %v1475_v10 = vsel %vm1357_vm3, %v4042_v1, 0.0 }
 0x392   : > { %3284 = vpow2.f32 %v1448_v5  ;;  %v1421_v2 = vsub.f32 %v3988_v3, %v1405_v9  ;;  %1476 = vadd.xlane.f32.xlu1 %v1475_v10  ;;  %v1402_v11 = vpop.xlane.xlu0 %1401  ;;  %v1472_v12 = vsel %vm1357_vm3, %v4044_v7, 0.0 }
 0x393   : > { %3286 = vpow2.f32 %v1446_v8  ;;  %v1420_v4 = vsub.f32 %v3994_v6, %v1402_v11  ;;  %1473 = vadd.xlane.f32.xlu0 %v1472_v12 }
 0x394   : > { %v4052_v13 = vpop.eup %3276  ;;  %v1452_v14 = vmul.f32 1.442695, %v1421_v2 }
 0x395   : > { %v4054_v15 = vpop.eup %3278  ;;  %v1450_v18 = vmul.f32 1.442695, %v1420_v4  ;;  %v1481_v19 = vsel %vm1357_vm3, %v4052_v13, 0.0  ;;  %v3207_v31 = vpop.permute.xlu1 %3206 }
 0x396   : > { %3288 = vpow2.f32 %v1452_v14  ;;  %1482 = vadd.xlane.f32.xlu1 %v1481_v19  ;;  %v1478_v3 = vsel %vm1357_vm3, %v4054_v15, 0.0  ;;  %v3202_v32 = vpop.permute.xlu0 %3201  ;;  %v3209_v52 = vunpack.i.h.bf16 %v3207_v31 }
 0x397   : > { %3290 = vpow2.f32 %v1450_v18  ;;  %1479 = vadd.xlane.f32.xlu0 %v1478_v3  ;;  %v3204_v40 = vunpack.i.h.bf16 %v3202_v32  ;;  %v3203_v41 = vunpack.i.l.bf16 %v3202_v32 }
 0x398   : > { %v4060_v20 = vpop.eup %3280 }
 0x399   : > { %v4062_v6 = vpop.eup %3282  ;;  %v1487_v21 = vsel %vm1357_vm3, %v4060_v20, 0.0  ;;  %v2997_v45 = vpack.c.bf16 %v3204_v40, %v3203_v41  ;;  %v2265_v40 = vld [vmem:[#allocation10] sm:$0xff]  ;;  %v2266_v41 = vld [vmem:[#allocation10 + $0x8] sm:$0xff] }
 0x39a   : > { %1488 = vadd.xlane.f32.xlu1 %v1487_v21  ;;  %v1484_v22 = vsel %vm1357_vm3, %v4062_v6, 0.0 }
 0x39b   : > { %1485 = vadd.xlane.f32.xlu0 %v1484_v22 }
 0x39c   : > { %v4068_v23 = vpop.eup %3284 }
 0x39d   : > { %v4070_v24 = vpop.eup %3286  ;;  %v1493_v25 = vsel %vm1357_vm3, %v4068_v23, 0.0 }
 0x39e   : > { %1494 = vadd.xlane.f32.xlu1 %v1493_v25  ;;  %v1490_v26 = vsel %vm1357_vm3, %v4070_v24, 0.0 }
 0x39f   : > { %1491 = vadd.xlane.f32.xlu0 %v1490_v26 }
 0x3a0   : > { %v4076_v27 = vpop.eup %3288 }
 0x3a1   : > { %v4078_v28 = vpop.eup %3290  ;;  %v1499_v29 = vsel %vm1357_vm3, %v4076_v27, 0.0 }
 0x3a2   : > { %1500 = vadd.xlane.f32.xlu1 %v1499_v29  ;;  %v1496_v30 = vsel %vm1357_vm3, %v4078_v28, 0.0 }
 0x3a3   : > { %1497 = vadd.xlane.f32.xlu0 %v1496_v30 }
 0x3b3   : > { %3216 = vrot.lane.b32.xlu1 %v3881_v49, %s3555_s8  ;;  %s2568_s8 = sshll.u32 %s3622_s25, 8  ;;  %s3564_s25 = smov [#allocation11]  }
 0x3b9   : > { %3211 = vrot.lane.b32.xlu0 %v3881_v49, %s3554_s10  ;;  %s2379_s10 = sshll.u32 %s327_s7, 4  ;;  %s4142_s10 = int_to_ptr.vmem [resolvable:$true] %s2379_s10 }
 0x3ba   : > { %s3466_s20 = scalar_lea.vmem %s4142_s10, 256 }
 0x3bb   : > { %p3467_p3 = scmp.ne.s32.totalorder %s4142_s10, %s3466_s20 }
 0x3bd   : > { %p3468_p5 = pnand %p3467_p3, %p3772_p10 }
 0x3bf   : > { %p3469_p7 = pneg %p3468_p5 }
 0x3c6   : > { %v1459_v33 = vpop.xlane.xlu1 %1458 }
 0x3c7   : > { %3292 = vrcp.f32 %v1459_v33  ;;  %v1456_v34 = vpop.xlane.xlu0 %1455 }
 0x3c8   : > { %3294 = vrcp.f32 %v1456_v34 }
 0x3d1   : > { %v3293_v35 = vpop.eup %3292 }
 0x3d2   : > { %v3295_v38 = vpop.eup %3294  ;;  %v1519_v43 = vmul.f32 %v3293_v35, %v4008_v16  ;;  %v3208_v16 = vunpack.i.l.bf16 %v3207_v31 }
 0x3d3   : > { %v1518_v42 = vmul.f32 %v3295_v38, %v4010_v17 }
 0x3d4   : > { %v3001_v58 = vpack.c.bf16 %v3209_v52, %v3208_v16 }
 0x3d5   : > { %2798 = vmatprep.mubr.msk.f32.mxu0 %vm1357_vm3, %v1518_v42  ;;  %v3013_v42 = vpack.c.bf16 %v2266_v41, %v2265_v40 }
 0x3d6   : > { %2799 = vmatmul.mubr.msk.f32.vlgmr.msra.gmra.mrb[8].mxu0 %vm1357_vm3, %v1519_v43  ;;  %v2267_v43 = vld [vmem:[#allocation10 + $0x10] sm:$0xff] }
 0x3d7   : > { %2992 = vmatpush3.bf16.msra.mxu0 %v3946_v37 }
 0x3d8   : > { %2998 = vmatprep.subr.bf16.mxu0 %v2997_v45 }
 0x413   : > { %v1465_v46 = vpop.xlane.xlu1 %1464 }
 0x414   : > { %3296 = vrcp.f32 %v1465_v46  ;;  %v1462_v47 = vpop.xlane.xlu0 %1461  ;;  %v2270_v46 = vld [vmem:[#allocation10 + $0x28] sm:$0xff] }
 0x415   : > { %3298 = vrcp.f32 %v1462_v47 }
 0x41b   : > { %v1471_v48 = vpop.xlane.xlu1 %1470 }
 0x41c   : > { %3300 = vrcp.f32 %v1471_v48  ;;  %v1468_v50 = vpop.xlane.xlu0 %1467 }
 0x41d   : > { %3302 = vrcp.f32 %v1468_v50 }
 0x41e   : > { %v3297_v51 = vpop.eup %3296 }
 0x41f   : > { %v3299_v17 = vpop.eup %3298  ;;  %v1477_v53 = vpop.xlane.xlu1 %1476  ;;  %v1521_v37 = vmul.f32 %v3297_v51, %v4020_v36  ;;  %v2271_v51 = vld [vmem:[#allocation10 + $0x30] sm:$0xff] }
 0x420   : > { %3304 = vrcp.f32 %v1477_v53  ;;  %v1474_v54 = vpop.xlane.xlu0 %1473  ;;  %v1520_v56 = vmul.f32 %v3299_v17, %v4022_v39  ;;  %v2272_v17 = vld [vmem:[#allocation10 + $0x38] sm:$0xff]  ;;  %v2273_v53 = vld [vmem:[#allocation10 + $0x40] sm:$0xff] }
 0x421   : > { %3306 = vrcp.f32 %v1474_v54  ;;  %v3025_v52 = vpack.c.bf16 %v2272_v17, %v2271_v51  ;;  %v2274_v54 = vld [vmem:[#allocation10 + $0x48] sm:$0xff] }
 0x422   : > { %2805 = vmatprep.mubr.msk.f32.mxu1 %vm1357_vm3, %v1520_v56 }
 0x423   : > { %v1483_v61 = vpop.xlane.xlu1 %1482  ;;  %2806 = vmatmul.mubr.msk.f32.vlgmr.msra.gmra.mrb[14].mxu1 %vm1357_vm3, %v1521_v37  ;;  %v3029_v37 = vpack.c.bf16 %v2274_v54, %v2273_v53 }
 0x424   : > { %3308 = vrcp.f32 %v1483_v61  ;;  %2996 = vmatpush3.bf16.msra.mxu1 %v3949_v44  ;;  %v1480_v60 = vpop.xlane.xlu0 %1479 }
 0x425   : > { %3002 = vmatprep.subr.bf16.mxu1 %v3001_v58  ;;  %3310 = vrcp.f32 %v1480_v60  ;;  %v2275_v60 = vld [vmem:[#allocation10 + $0x50] sm:$0xff] }
 0x426   : > { %v3301_v63 = vpop.eup %3300 }
 0x427   : > { %v3303_v0 = vpop.eup %3302  ;;  %v1489_v59 = vpop.xlane.xlu1 %1488  ;;  %v1523_v62 = vmul.f32 %v3301_v63, %v4032_v55  ;;  %v2276_v63 = vld [vmem:[#allocation10 + $0x58] sm:$0xff] }
 0x428   : > { %3312 = vrcp.f32 %v1489_v59  ;;  %v1486_v39 = vpop.xlane.xlu0 %1485  ;;  %v1522_v36 = vmul.f32 %v3303_v0, %v4034_v57  ;;  %v3033_v59 = vpack.c.bf16 %v2276_v63, %v2275_v60 }
 0x429   : > { %3314 = vrcp.f32 %v1486_v39 }
 0x42a   : > { %v3305_v5 = vpop.eup %3304  ;;  %2812 = vmatprep.mubr.msk.f32.mxu0 %vm1357_vm3, %v1522_v36 }
 0x42b   : > { %v3307_v8 = vpop.eup %3306  ;;  %v1495_v9 = vpop.xlane.xlu1 %1494  ;;  %2813 = vmatmul.mubr.msk.f32.vlgmr.msra.gmra.mrb[10].mxu0 %vm1357_vm3, %v1523_v62  ;;  %v1525_v2 = vmul.f32 %v3305_v5, %v4042_v1  ;;  %v2277_v62 = vld [vmem:[#allocation10 + $0x60] sm:$0xff]  ;;  %v2278_v5 = vld [vmem:[#allocation10 + $0x68] sm:$0xff] }
 0x42c   : > { %3000 = vmatpush3.bf16.msra.mxu0 %v2997_v45  ;;  %v1492_v44 = vpop.xlane.xlu0 %1491  ;;  %v1524_v10 = vmul.f32 %v3307_v8, %v4044_v7  ;;  %v2268_v45 = vld [vmem:[#allocation10 + $0x18] sm:$0xff] }
 0x42d   : > { %3316 = vrcp.f32 %v1492_v44 }
 0x42e   : > { %v3309_v11 = vpop.eup %3308  ;;  %3318 = vrcp.f32 %v1495_v9  ;;  %2819 = vmatprep.mubr.msk.f32.mxu1 %vm1357_vm3, %v1524_v10  ;;  %v3037_v9 = vpack.c.bf16 %v2278_v5, %v2277_v62 }
 0x42f   : > { %v3311_v55 = vpop.eup %3310  ;;  %v1501_v57 = vpop.xlane.xlu1 %1500  ;;  %2820 = vmatmul.mubr.msk.f32.vlgmr.msra.gmra.mrb[16].mxu1 %vm1357_vm3, %v1525_v2  ;;  %v1527_v14 = vmul.f32 %v3309_v11, %v4052_v13  ;;  %v2279_v2 = vld [vmem:[#allocation10 + $0x70] sm:$0xff]  ;;  %v2280_v11 = vld [vmem:[#allocation10 + $0x78] sm:$0xff] }
 0x430   : > { %3320 = vrcp.f32 %v1501_v57  ;;  %3004 = vmatpush3.bf16.msra.mxu1 %v3001_v58  ;;  %v1498_v12 = vpop.xlane.xlu0 %1497  ;;  %v1526_v4 = vmul.f32 %v3311_v55, %v4054_v15  ;;  %v3041_v57 = vpack.c.bf16 %v2280_v11, %v2279_v2 }
 0x431   : > { %3322 = vrcp.f32 %v1498_v12 }
 0x432   : > { %v3313_v7 = vpop.eup %3312  ;;  %2826 = vmatprep.mubr.msk.f32.mxu0 %vm1357_vm3, %v1526_v4 }
 0x433   : > { %v3315_v1 = vpop.eup %3314  ;;  %v3217_v18 = vpop.permute.xlu1 %3216  ;;  %2827 = vmatmul.mubr.msk.f32.vlgmr.msra.gmra.mrb[12].mxu0 %vm1357_vm3, %v1527_v14  ;;  %v1529_v25 = vmul.f32 %v3313_v7, %v4060_v20 }
 0x434   : > { %v3219_v19 = vunpack.i.h.bf16 %v3217_v18  ;;  %v3218_v3 = vunpack.i.l.bf16 %v3217_v18  ;;  %v3212_v21 = vpop.permute.xlu0 %3211  ;;  %v1528_v22 = vmul.f32 %v3315_v1, %v4062_v6 }
 0x435   : > { %v3214_v26 = vunpack.i.h.bf16 %v3212_v21  ;;  %v3213_v29 = vunpack.i.l.bf16 %v3212_v21 }
 0x436   : > { %v3009_v15 = vpack.c.bf16 %v3219_v19, %v3218_v3  ;;  %2833 = vmatprep.mubr.msk.f32.mxu1 %vm1357_vm3, %v1528_v22 }
 0x437   : > { %v3317_v13 = vpop.eup %3316  ;;  %v3005_v30 = vpack.c.bf16 %v3214_v26, %v3213_v29  ;;  %2834 = vmatmul.mubr.msk.f32.vlgmr.msra.gmra.mrb[18].mxu1 %vm1357_vm3, %v1529_v25 }
 0x438   : > { %v3319_v31 = vpop.eup %3318  ;;  %3010 = vmatprep.subr.bf16.mxu1 %v3009_v15  ;;  %v1530_v32 = vmul.f32 %v3317_v13, %v4070_v24 }
 0x439   : > { %3006 = vmatprep.subr.bf16.mxu0 %v3005_v30  ;;  %3012 = vmatpush3.bf16.msra.mxu1 %v3009_v15  ;;  %v1531_v6 = vmul.f32 %v3319_v31, %v4068_v23  ;;  %v3017_v23 = vpack.c.bf16 %v2268_v45, %v2267_v43 }
 0x43a   : > { %v3321_v33 = vpop.eup %3320  ;;  %3008 = vmatpush3.bf16.msra.mxu0 %v3005_v30  ;;  %2840 = vmatprep.mubr.msk.f32.mxu0 %vm1357_vm3, %v1530_v32 }
 0x43b   : > { %v3323_v20 = vpop.eup %3322  ;;  %v1533_v35 = vmul.f32 %v3321_v33, %v4076_v27  ;;  %3014 = vmatprep.subr.bf16.mxu0 %v3013_v42 }
 0x43c   : > { %v1532_v34 = vmul.f32 %v3323_v20, %v4078_v28  ;;  %v2269_v28 = vld [vmem:[#allocation10 + $0x20] sm:$0xff] }
 0x43d   : > { %2841 = vmatmul.mubr.msk.f32.vlgmr.msra.gmra.mrb[14].mxu0 %vm1357_vm3, %v1531_v6  ;;  %v3021_v48 = vpack.c.bf16 %v2270_v46, %v2269_v28 }
 0x43e   : > { %2847 = vmatprep.mubr.msk.f32.mxu1 %vm1357_vm3, %v1532_v34  ;;  %3016 = vmatpush3.bf16.msra.mxu0 %v3013_v42 }
 0x43f   : > { %2848 = vmatmul.mubr.msk.f32.vlgmr.msra.gmra.mrb[20].mxu1 %vm1357_vm3, %v1533_v35  ;;  %3018 = vmatprep.subr.bf16.mxu0 %v3017_v23 }
 0x442   : > { %3020 = vmatpush3.bf16.msra.mxu0 %v3017_v23 }
 0x443   : > { %3022 = vmatprep.subr.bf16.mxu0 %v3021_v48 }
 0x446   : > { %3024 = vmatpush3.bf16.msra.mxu0 %v3021_v48 }
 0x447   : > { %3026 = vmatprep.subr.bf16.mxu0 %v3025_v52 }
 0x44a   : > { %3028 = vmatpush3.bf16.msra.mxu0 %v3025_v52 }
 0x44b   : > { %3030 = vmatprep.subr.bf16.mxu0 %v3029_v37 }
 0x44e   : > { %3032 = vmatpush3.bf16.msra.mxu0 %v3029_v37 }
 0x44f   : > { %3034 = vmatprep.subr.bf16.mxu0 %v3033_v59 }
 0x452   : > { %3036 = vmatpush3.bf16.msra.mxu0 %v3033_v59 }
 0x453   : > { %3038 = vmatprep.subr.bf16.mxu0 %v3037_v9 }
 0x456   : > { %3040 = vmatpush3.bf16.msra.mxu0 %v3037_v9 }
 0x457   : > { %3042 = vmatprep.subr.bf16.mxu0 %v3041_v57 }
 0x45a   : > { %3044 = vmatpush3.bf16.msra.mxu0 %v3041_v57 }
 0x4a9   : > { %v4122_v24 = vpop.f32.mrb[8].mxu0 }
 0x4aa   : > { %v4124_v38 = vpop.f32.mrb[9].mxu0 }
 0x4f6   : > { %v2807_v27 = vpop.f32.mrb[14].mxu1 }
 0x4f7   : > { %v1687_v47 = vpop.f32.mrb[15].mxu1 }
 0x4f8   : > { %v3220_v50 = vpack.i.bf16 %v2807_v27, %v1687_v47 }
 0x4fa   : > { %3221 = vrot.lane.b32.xlu0 %v3220_v50, %s3556_s17 }
 0x4fe   : > { %v2814_v16 = vpop.f32.mrb[10].mxu0 }
 0x4ff   : > { %v1768_v56 = vpop.f32.mrb[11].mxu0 }
 0x500   : > { %v3225_v58 = vpack.i.bf16 %v2814_v16, %v1768_v56 }
 0x502   : > { %3226 = vrot.lane.b32.xlu1 %v3225_v58, %s3557_s19  ;;  %v2821_v61 = vpop.f32.mrb[16].mxu1 }
 0x503   : > { %v1849_v0 = vpop.f32.mrb[17].mxu1 }
 0x504   : > { %v3230_v39 = vpack.i.bf16 %v2821_v61, %v1849_v0  ;;  %v2561_v61 = vld [vmem:[%s4197_s5] ss:$0 sm:$0xff] }
 0x506   : > { %3231 = vrot.lane.b32.xlu0 %v3230_v39, %s3558_s14  ;;  %v2828_v36 = vpop.f32.mrb[12].mxu0 }
 0x507   : > { %v1930_v8 = vpop.f32.mrb[13].mxu0 }
 0x508   : > { %v3235_v44 = vpack.i.bf16 %v2828_v36, %v1930_v8 }
 0x50a   : > { %v2835_v10 = vpop.f32.mrb[18].mxu1  ;;  %3236 = vrot.lane.b32.xlu1 %v3235_v44, %s3559_s26  ;;  %s4147_s26 = scalar_lea.hbm %s4198_s6, %s2568_s8 }
 0x50b   : > { %v2011_v55 = vpop.f32.mrb[19].mxu1 }
 0x50c   : > { %v3240_v12 = vpack.i.bf16 %v2835_v10, %v2011_v55 }
 0x50e   : > { %3241 = vrot.lane.b32.xlu0 %v3240_v12, %s3560_s12  ;;  %s2366_s12 = scalar_lea.sflag [#allocation4], %s3827_s13 }
 0x510   : > { %v2842_v4 = vpop.f32.mrb[14].mxu0 }
 0x511   : > { %v2092_v14 = vpop.f32.mrb[15].mxu0 }
 0x512   : > { %v3245_v7 = vpack.i.bf16 %v2842_v4, %v2092_v14  ;;  %v2849_v1 = vpop.f32.mrb[20].mxu1 }
 0x513   : > { %v2173_v18 = vpop.f32.mrb[21].mxu1 }
 0x514   : > { %v3250_v19 = vpack.i.bf16 %v2849_v1, %v2173_v18  ;;  %3246 = vrot.lane.b32.xlu1 %v3245_v7, %s3561_s11  ;;  %s3470_s11 = sshll.u32 %s3564_s25, 4  ;;  %s3471_s11 = int_to_ptr.vmem [resolvable:$false] %s3470_s11 }
 0x515   : > { %p3473_p12 = scmp.lt.s32.totalorder %s4142_s10, %s3471_s11 }
 0x516   : > { %3251 = vrot.lane.b32.xlu0 %v3250_v19, %s3562_s27  ;;  %s3472_s27 = scalar_lea.vmem %s3471_s11, 512 }
 0x517   : > { %p3474_p1 = scmp.lt.s32.totalorder %s3472_s27, %s3466_s20 }
 0x518   : > { %3256 = vrot.lane.b32.xlu1 %v3881_v49, %s3563_s29 }
 0x519   : > { %p3475_p2 = por %p3474_p1, %p3473_p12 }
 0x51b   : > { %p3476_p13 = pnand %p3475_p2, %p3469_p7 }
 0x56c   : > { %v3222_v3 = vpop.permute.xlu0 %3221 }
 0x56d   : > { %v3224_v25 = vunpack.i.h.bf16 %v3222_v3  ;;  %v3223_v26 = vunpack.i.l.bf16 %v3222_v3 }
 0x56f   : > { %v2245_v6 = vsel %vm692_vm1, %v4122_v24, %v3224_v25  ;;  %v2244_v49 = vsel %vm692_vm1, %v4124_v38, %v3223_v26 }
 0x574   : > { %v3227_v21 = vpop.permute.xlu1 %3226 }
 0x575   : > { %v3229_v15 = vunpack.i.h.bf16 %v3227_v21  ;;  %v3228_v13 = vunpack.i.l.bf16 %v3227_v21 }
 0x577   : > { %v2246_v40 = vsel %vm1357_vm3, %v2244_v49, %v3228_v13  ;;  %v2247_v41 = vsel %vm1357_vm3, %v2245_v6, %v3229_v15 }
 0x578   : > { %v3232_v22 = vpop.permute.xlu0 %3231 }
 0x579   : > { %v3234_v31 = vunpack.i.h.bf16 %v3232_v22  ;;  %v3233_v32 = vunpack.i.l.bf16 %v3232_v22 }
 0x57b   : > { %v2249_v42 = vsel %vm2248_vm4, %v2246_v40, %v3233_v32  ;;  %v2250_v43 = vsel %vm2248_vm4, %v2247_v41, %v3234_v31 }
 0x57c   : > { %v3237_v29 = vpop.permute.xlu1 %3236 }
 0x57d   : > { %v3239_v33 = vunpack.i.h.bf16 %v3237_v29  ;;  %v3238_v20 = vunpack.i.l.bf16 %v3237_v29 }
 0x57f   : > { %v2253_v23 = vsel %vm2251_vm5, %v2250_v43, %v3239_v33  ;;  %v2252_v27 = vsel %vm2251_vm5, %v2249_v42, %v3238_v20 }
 0x580   : > { %v3242_v30 = vpop.permute.xlu0 %3241 }
 0x581   : > { %v3244_v34 = vunpack.i.h.bf16 %v3242_v30  ;;  %v3243_v35 = vunpack.i.l.bf16 %v3242_v30 }
 0x583   : > { %v2255_v47 = vsel %vm2254_vm6, %v2252_v27, %v3243_v35  ;;  %v2256_v24 = vsel %vm2254_vm6, %v2253_v23, %v3244_v34 }
 0x586   : > { %v3247_v45 = vpop.permute.xlu1 %3246 }
 0x587   : > { %v3249_v28 = vunpack.i.h.bf16 %v3247_v45  ;;  %v3248_v46 = vunpack.i.l.bf16 %v3247_v45 }
 0x588   : > { %v3252_v38 = vpop.permute.xlu0 %3251 }
 0x589   : > { %v2259_v48 = vsel %vm2257_vm7, %v2256_v24, %v3249_v28  ;;  %v3254_v50 = vunpack.i.h.bf16 %v3252_v38  ;;  %v3253_v51 = vunpack.i.l.bf16 %v3252_v38  ;;  %v2258_v17 = vsel %vm2257_vm7, %v2255_v47, %v3248_v46 }
 0x58a   : > { %v3257_v52 = vpop.permute.xlu1 %3256 }
 0x58b   : > { %v2262_v16 = vsel %vm2260_vm8, %v2259_v48, %v3254_v50  ;;  %v3259_v53 = vunpack.i.h.bf16 %v3257_v52  ;;  %v3258_v54 = vunpack.i.l.bf16 %v3257_v52  ;;  %v2261_v56 = vsel %vm2260_vm8, %v2258_v17, %v3253_v51 }
 0x58d   : > { %v2263_v37 = vsel %vm338_vm0, %v2261_v56, %v3258_v54  ;;  %v2264_v58 = vsel %vm338_vm0, %v2262_v16, %v3259_v53 }
 0x58e   : > { %2882 = vmatprep.mubr.f32.mxu0 %v2263_v37 }
 0x58f   : > { %2883 = vmatmul.mubr.f32.vlgmr.msra.gmra.mrb[16].mxu0 %v2264_v58 }
 0x662   : > { %v2884_v60 = vpop.f32.mrb[16].mxu0 }
 0x663   : > { %v2360_v63 = vadd.f32 %v2884_v60, %v2561_v61  ;;  %v2354_v0 = vpop.f32.mrb[17].mxu0 }
 0x664   : > { %v2355_v59 = vadd.f32 %v2561_v61, %v2354_v0 }
 0x665   : > { %2364 = vst [vmem:[%s327_s7 + $0x8] sm:$0xff] %v2360_v63 }
 0x666   : > { %2363 = vst [vmem:[%s327_s7] sm:$0xff] %v2355_v59 }
 0x667   : > { %3479 = shalt.err (!%p3476_p13)
}
 0x668   : > { %s3480_s29 = scalar_lea.hbm %s4147_s26, 256  ;;  %s3484_s7 = scalar_lea.hbm %s4198_s6, 512 }
 0x669   : > { %p3481_p9 = scmp.ne.s32.totalorder %s4147_s26, %s3480_s29  ;;  %p3485_p4 = scmp.lt.u32.totalorder %s4147_s26, %s4198_s6 }
 0x66a   : > { %p3486_p8 = scmp.lt.u32.totalorder %s3484_s7, %s3480_s29  ;;  %p3488_p3 = scmp.lt.u32.totalorder %s3480_s29, %s4147_s26 }
 0x66b   : > { %p3482_p0 = pnand %p3481_p9, %p3772_p10 }
 0x66c   : > { %p3487_p6 = por %p3486_p8, %p3485_p4 }
 0x66d   : > { %p3483_p11 = pneg %p3482_p0 }
 0x66e   : > { %p3489_p5 = por %p3488_p3, %p3487_p6 }
 0x670   : > { %p3490_p7 = pnand %p3489_p5, %p3483_p11 }
 0x672   : > { %3493 = shalt.err (!%p3490_p7)
}
 0x673   : > { %s3565_s14 = smov 128  }
 0x674   : > { %3063 = dma.vmem_to_hbm [thread:$0]  (%p3772_p10), %s4142_s10, 256, %s4147_s26, %s2366_s12, %s3565_s14, %s3565_s14, %s3556_s17  }
 0x675 PF: > { %s2394_s20 = sand.u32 1, %s3528_s21   ;;  %p4218_p12 = scmp.ne.s32.totalorder %s4203_s28, 0 }
 0x676   : > { %p4219_p1 = scmp.ge.s32.totalorder %s3540_s24, 2  ;;  %s2395_s25 = scalar_lea.sflag [#allocation4], %s2394_s20 }
 0x678   : > { %p3083_p2 = pnand %p4219_p1, %p4218_p12 }
 0x67a   : > { %3523 = dma.done.wait (!%p3083_p2), %s2395_s25, 256  }
 0x67b   : > { %3525 = vsyncadd (!%p3083_p2), %s2395_s25, 4294967040  ;;  %p21_p13 = scmp.ge.s32.totalorder %s3762_s18, 4   ;;  %s4220_s21 = smov %s3532_s22 }
 0x67c   : > { %s4221_s22 = smov %s3536_s23  ;;  %s4222_s23 = smov %s3778_s16 }
 0x67d   : > { %s4223_s24 = smov %s3762_s18  ;;  %23 = sbr.rel (!%p21_p13) target bundleno = 7 (0x7), region = 105 }
 0x684   :  { %2400 = vsyncpa [#allocation3], 1 }
 0x685   :  { %2402 = vsyncpa [#allocation3 + $0x1], 1 }
 0x686   :  { %2403 = vsyncpa [#allocation6], 1 }
 0x687   :  { %2404 = vsyncpa [#allocation9], 1 }
 0x688   :  { %2405 = vsyncpa [#allocation4], 1 }
 0x689   :  { %2407 = vsyncpa [#allocation4 + $0x1], 1 }

</bundles_post_ra>
